<compile_context>
chip_gen: v5e
topology: v5e:2x2
jax: 0.10.0
libtpu: 0.0.40
codegen_flags: <defaults>
</compile_context>

<pallas_src>
import functools
import math

import jax
import jax.numpy as jnp
from jax import lax
from jax.experimental import pallas as pl
from jax.experimental.pallas import tpu as pltpu

LN_EPS = 1e-5


def _gelu_tanh(x):
    c = 0.7978845608028654  # sqrt(2/pi)
    return 0.5 * x * (1.0 + jnp.tanh(c * (x + 0.044715 * x * x * x)))


def _layernorm(v, gamma, beta):
    mu = jnp.mean(v, axis=-1, keepdims=True)
    cen = v - mu
    var = jnp.mean(cen * cen, axis=-1, keepdims=True)
    return cen * lax.rsqrt(var + LN_EPS) * gamma + beta


def transformer_kernel(x_ref, vecs_ref, wqkv_ref, wout_ref, bff1_ref,
                       wff1_ref, wff2_ref, out_ref, *, heads, dim_head):
    """One grid step = (batch tile b, layer l).

    The output block index depends only on b, so the same VMEM block is
    revisited for every l and carries the residual stream across the whole
    layer stack.  NOTE: this REQUIRES the layer axis to be the innermost grid
    axis and marked "arbitrary"; do not reorder the grid.
    """
    l = pl.program_id(1)

    # Layer 0: load the input activations into the resident output block.
    @pl.when(l == 0)
    def _():
        out_ref[...] = x_ref[...]

    bt, n, d = out_ref.shape
    m = bt * n
    inner = heads * dim_head
    scale = dim_head ** -0.5
    f32, bf16 = jnp.float32, jnp.bfloat16

    # Residual stream flattened to (bt*n, d): full-M dense matmuls.
    x = out_ref[...].reshape(m, d).astype(f32)

    # Packed per-layer vectors (rows: ln1g, ln1b, b_out, ln2g, ln2b, b_ff2).
    vecs = vecs_ref[0]
    ln1g, ln1b = vecs[0:1], vecs[1:2]
    b_out = vecs[2:3]
    ln2g, ln2b = vecs[3:4], vecs[4:5]
    b_ff2 = vecs[5:6]

    # ---------------- Attention sub-layer: x = x + Wo(MHSA(LN(x))) ----------
    h_in = _layernorm(x, ln1g, ln1b)                 # (m, d) f32
    h_b = h_in.astype(bf16)
    # Three separate full-width projections; bf16 operands, f32 accumulation.
    q = jnp.dot(h_b, wqkv_ref[0, 0], preferred_element_type=f32) * scale
    k = jnp.dot(h_b, wqkv_ref[0, 1], preferred_element_type=f32)
    v = jnp.dot(h_b, wqkv_ref[0, 2], preferred_element_type=f32)

    def split_heads(t):
        # (m, inner) -> (heads*bt, n, dim_head); group order = (head, batch).
        # Head slices are lane-aligned whenever dim_head % 128 == 0.
        t3 = t.reshape(bt, n, inner)
        return jnp.concatenate(
            [t3[:, :, h * dim_head:(h + 1) * dim_head] for h in range(heads)],
            axis=0)

    qh = split_heads(q).astype(bf16)
    kh = split_heads(k).astype(bf16)
    vh = split_heads(v).astype(bf16)

    # Batched-over-(head, batch) attention: canonical 3-D einsum forms.
    dots = jnp.einsum('gid,gjd->gij', qh, kh, preferred_element_type=f32)
    dots = dots - jnp.max(dots, axis=-1, keepdims=True)
    e = jnp.exp(dots)
    attn = e * pl.reciprocal(jnp.sum(e, axis=-1, keepdims=True), approx=True)
    o = jnp.einsum('gij,gjd->gid', attn.astype(bf16), vh,
                   preferred_element_type=f32)          # (heads*bt, n, dh)

    # Merge heads back to (m, inner), then ONE output projection.
    o = jnp.concatenate([o[h * bt:(h + 1) * bt] for h in range(heads)],
                        axis=-1)                        # (bt, n, inner)
    o = o.reshape(m, inner)
    proj = jnp.dot(o.astype(bf16), wout_ref[0], preferred_element_type=f32)
    x = x + proj + b_out

    # ---------------- FeedForward sub-layer: x = x + MLP(LN(x)) -------------
    h2 = _layernorm(x, ln2g, ln2b)
    mid = jnp.dot(h2.astype(bf16), wff1_ref[0],
                  preferred_element_type=f32) + bff1_ref[0]
    mid = _gelu_tanh(mid)
    ff = jnp.dot(mid.astype(bf16), wff2_ref[0],
                 preferred_element_type=f32) + b_ff2
    x = x + ff

    out_ref[...] = x.reshape(bt, n, d).astype(out_ref.dtype)


def transformer_forward(x, params, *, heads, dim_head, batch_tile=None):
    """x: (B, N, D) float32 -> (B, N, D) float32."""
    vecs, wqkv, wout, bff1, wff1, wff2 = params
    B, N, D = x.shape
    depth = wqkv.shape[0]
    inner = heads * dim_head
    mlp = wff1.shape[-1]
    assert wqkv.shape == (depth, 3, D, inner)

    # Fold the batch dim into the block (not the grid): weights are streamed
    # once per batch tile.  Keep >= 2 batch tiles for megacore on v7x; a
    # single tile minimizes weight re-fetch on v5e/v6e.
    if batch_tile is None:
        batch_tile = B
    assert B % batch_tile == 0
    num_btiles = B // batch_tile

    kernel = functools.partial(transformer_kernel, heads=heads,
                               dim_head=dim_head)

    per_batch = lambda b, l: (b, 0, 0)         # activations: resident over l
    per_layer3 = lambda b, l: (l, 0, 0)        # stacked per-layer weights
    per_layer4 = lambda b, l: (l, 0, 0, 0)

    def nbytes(shape, dtype):
        return math.prod(shape) * jnp.dtype(dtype).itemsize

    # Explicit scoped-VMEM budget: double-buffered blocks + generous headroom.
    blk_bytes = (
        2 * nbytes((batch_tile, N, D), jnp.float32)            # x + out
        + nbytes((8, D), vecs.dtype)
        + nbytes((3, D, inner), wqkv.dtype)
        + nbytes((inner, D), wout.dtype)
        + nbytes((1, mlp), bff1.dtype)
        + nbytes((D, mlp), wff1.dtype)
        + nbytes((mlp, D), wff2.dtype)
    )
    vmem_limit = int(min(4 * blk_bytes + (32 << 20), 64 << 20))

    out = pl.pallas_call(
        kernel,
        out_shape=jax.ShapeDtypeStruct((B, N, D), jnp.float32),
        grid_spec=pltpu.PrefetchScalarGridSpec(
            num_scalar_prefetch=0,
            grid=(num_btiles, depth),   # depth innermost => residual carry
            in_specs=[
                pl.BlockSpec((batch_tile, N, D), per_batch),     # x
                pl.BlockSpec((1, 8, D), per_layer3),             # packed vecs
                pl.BlockSpec((1, 3, D, inner), per_layer4),      # Wq/Wk/Wv
                pl.BlockSpec((1, inner, D), per_layer3),         # W_out
                pl.BlockSpec((1, 1, mlp), per_layer3),           # b_ff1
                pl.BlockSpec((1, D, mlp), per_layer3),           # W_ff1
                pl.BlockSpec((1, mlp, D), per_layer3),           # W_ff2
            ],
            out_specs=pl.BlockSpec((batch_tile, N, D), per_batch),
        ),
        compiler_params=pltpu.CompilerParams(
            dimension_semantics=("parallel", "arbitrary"),
            vmem_limit_bytes=vmem_limit),
    )(x, vecs, wqkv, wout, bff1, wff1, wff2)
    return out


# ------------------ deterministic parameter construction --------------------

def make_params(key, depth, dim, heads, dim_head, mlp_dim):
    inner = heads * dim_head
    ks = jax.random.split(key, 11)
    f32, bf16 = jnp.float32, jnp.bfloat16
    ln1g = 1.0 + 0.1 * jax.random.normal(ks[0], (depth, dim), f32)
    ln1b = 0.05 * jax.random.normal(ks[1], (depth, dim), f32)
    bout = 0.05 * jax.random.normal(ks[2], (depth, dim), f32)
    ln2g = 1.0 + 0.1 * jax.random.normal(ks[3], (depth, dim), f32)
    ln2b = 0.05 * jax.random.normal(ks[4], (depth, dim), f32)
    bff2 = 0.05 * jax.random.normal(ks[5], (depth, dim), f32)
    pad = jnp.zeros((depth, 2, dim), f32)
    # rows: ln1g, ln1b, b_out, ln2g, ln2b, b_ff2, 0, 0  -> (depth, 8, dim)
    vecs = jnp.concatenate(
        [t[:, None, :] for t in (ln1g, ln1b, bout, ln2g, ln2b, bff2)] + [pad],
        axis=1)
    wqkv = (0.1 * jax.random.normal(ks[6], (depth, 3, dim, inner), f32)).astype(bf16)
    wout = (0.1 * jax.random.normal(ks[7], (depth, inner, dim), f32)).astype(bf16)
    bff1 = 0.05 * jax.random.normal(ks[8], (depth, 1, mlp_dim), f32)
    wff1 = (0.1 * jax.random.normal(ks[9], (depth, dim, mlp_dim), f32)).astype(bf16)
    wff2 = (0.1 * jax.random.normal(ks[10], (depth, mlp_dim, dim), f32)).astype(bf16)
    return (vecs, wqkv, wout, bff1, wff1, wff2)


# ------------------ pure-JAX reference (correctness check) ------------------

def reference_forward(x, params, heads, dim_head):
    """Standard multi-head formulation (mirrors the PyTorch module), with the
    same bf16-operand / f32-accumulation matmul numerics as the kernel."""
    vecs, wqkv, wout, bff1, wff1, wff2 = params
    depth = wqkv.shape[0]
    B, N, D = x.shape
    inner = heads * dim_head
    scale = dim_head ** -0.5
    f32, bf = jnp.float32, jnp.bfloat16

    def ln(v, g, b):
        mu = jnp.mean(v, axis=-1, keepdims=True)
        var = jnp.mean((v - mu) ** 2, axis=-1, keepdims=True)
        return (v - mu) / jnp.sqrt(var + LN_EPS) * g + b

    for l in range(depth):
        ln1g, ln1b, bout, ln2g, ln2b, bff2 = (vecs[l, i] for i in range(6))
        # Attention sub-layer
        h = ln(x, ln1g, ln1b).astype(bf)
        q = jnp.einsum('bnd,de->bne', h, wqkv[l, 0], preferred_element_type=f32) * scale
        k = jnp.einsum('bnd,de->bne', h, wqkv[l, 1], preferred_element_type=f32)
        v = jnp.einsum('bnd,de->bne', h, wqkv[l, 2], preferred_element_type=f32)
        split = lambda t: t.reshape(B, N, heads, dim_head).transpose(0, 2, 1, 3)
        q, k, v = split(q), split(k), split(v)
        dots = jnp.einsum('bhid,bhjd->bhij', q.astype(bf), k.astype(bf),
                          preferred_element_type=f32)
        attn = jax.nn.softmax(dots, axis=-1)
        o = jnp.einsum('bhij,bhjd->bhid', attn.astype(bf), v.astype(bf),
                       preferred_element_type=f32)
        o = o.transpose(0, 2, 1, 3).reshape(B, N, inner)
        x = x + jnp.einsum('bni,id->bnd', o.astype(bf), wout[l],
                           preferred_element_type=f32) + bout
        # FeedForward sub-layer
        h2 = ln(x, ln2g, ln2b).astype(bf)
        mid = _gelu_tanh(jnp.einsum('bnd,dm->bnm', h2, wff1[l],
                                    preferred_element_type=f32) + bff1[l, 0])
        x = x + jnp.einsum('bnm,md->bnd', mid.astype(bf), wff2[l],
                           preferred_element_type=f32) + bff2
    return x


if __name__ == "__main__":
    B, N, DIM = 4, 8, 32          # batch=4, seq=8, hidden=32
    HEADS, DIM_HEAD = 4, 8        # inner_dim = 32
    MLP_DIM, DEPTH = 64, 2        # dropout = 0 (inference)

    key = jax.random.PRNGKey(0)
    kx, kp = jax.random.split(key)
    x = jax.random.normal(kx, (B, N, DIM), jnp.float32)
    params = make_params(kp, DEPTH, DIM, HEADS, DIM_HEAD, MLP_DIM)

    # batch_tile=2 -> grid=(2, depth): batch folded into the block, while the
    # leading "parallel" axis keeps extent 2 for megacore sharding on v7x.
    out = transformer_forward(x, params, heads=HEADS, dim_head=DIM_HEAD,
                              batch_tile=2)
    out = jax.block_until_ready(out)

    ref = jax.block_until_ready(reference_forward(x, params, HEADS, DIM_HEAD))
    assert out.shape == (B, N, DIM)
    assert jnp.allclose(out, ref, atol=1e-2, rtol=1e-2), (
        float(jnp.max(jnp.abs(out - ref))))
    print("KERNEL_OK")
</pallas_src>

<mosaic_0001>
module attributes {stable_mosaic.version = 11 : i64} {
  func.func @transformer_kernel(%arg0: i32, %arg1: i32, %arg2: memref<2x8x32xf32, #tpu.memory_space<vmem>>, %arg3: memref<1x8x32xf32, #tpu.memory_space<vmem>>, %arg4: memref<1x3x32x32xbf16, #tpu.memory_space<vmem>>, %arg5: memref<1x32x32xbf16, #tpu.memory_space<vmem>>, %arg6: memref<1x1x64xf32, #tpu.memory_space<vmem>>, %arg7: memref<1x32x64xbf16, #tpu.memory_space<vmem>>, %arg8: memref<1x64x32xbf16, #tpu.memory_space<vmem>>, %arg9: memref<2x8x32xf32, #tpu.memory_space<vmem>>) attributes {dimension_semantics = [#tpu.dimension_semantics<parallel>, #tpu.dimension_semantics<arbitrary>], iteration_bounds = array<i64: 2, 2>, scalar_prefetch = 0 : i64, scratch_operands = 0 : i64, tpu.core_type = #tpu.core_type<tc>, window_params = [{transform_indices = @transform_0, window_bounds = array<i64: 2, 8, 32>}, {transform_indices = @transform_1, window_bounds = array<i64: 1, 8, 32>}, {transform_indices = @transform_2, window_bounds = array<i64: 1, 3, 32, 32>}, {transform_indices = @transform_3, window_bounds = array<i64: 1, 32, 32>}, {transform_indices = @transform_4, window_bounds = array<i64: 1, 1, 64>}, {transform_indices = @transform_5, window_bounds = array<i64: 1, 32, 64>}, {transform_indices = @transform_6, window_bounds = array<i64: 1, 64, 32>}, {transform_indices = @transform_7, window_bounds = array<i64: 2, 8, 32>}]} {
    %c0_i32 = arith.constant 0 : i32
    %0 = arith.cmpi eq, %arg1, %c0_i32 : i32
    %1 = arith.extui %0 : i1 to i32
    %c0_i32_0 = arith.constant 0 : i32
    %2 = arith.cmpi ne, %1, %c0_i32_0 : i32
    scf.if %2 {
      %c0_55 = arith.constant 0 : index
      %c0_56 = arith.constant 0 : index
      %c0_57 = arith.constant 0 : index
      %142 = vector.load %arg2[%c0_55, %c0_56, %c0_57] : memref<2x8x32xf32, #tpu.memory_space<vmem>>, vector<2x8x32xf32>
      %c0_58 = arith.constant 0 : index
      %c0_59 = arith.constant 0 : index
      %c0_60 = arith.constant 0 : index
      %143 = vector.load %arg9[%c0_58, %c0_59, %c0_60] : memref<2x8x32xf32, #tpu.memory_space<vmem>>, vector<2x8x32xf32>
      tpu.vector_store %arg9[%c0_58, %c0_59, %c0_60], %142 {strides = array<i32>} : memref<2x8x32xf32, #tpu.memory_space<vmem>>, vector<2x8x32xf32>,
    } else {
    }
    %c0 = arith.constant 0 : index
    %c0_1 = arith.constant 0 : index
    %c0_2 = arith.constant 0 : index
    %3 = vector.load %arg9[%c0, %c0_1, %c0_2] : memref<2x8x32xf32, #tpu.memory_space<vmem>>, vector<2x8x32xf32>
    %4 = vector.shape_cast %3 : vector<2x8x32xf32> to vector<16x32xf32>
    %c0_3 = arith.constant 0 : index
    %c0_4 = arith.constant 0 : index
    %c0_5 = arith.constant 0 : index
    %5 = vector.load %arg3[%c0_3, %c0_4, %c0_5] : memref<1x8x32xf32, #tpu.memory_space<vmem>>, vector<1x8x32xf32>
    %6 = vector.shape_cast %5 : vector<1x8x32xf32> to vector<8x32xf32>
    %7 = vector.extract_strided_slice %6 {offsets = [0, 0], sizes = [1, 32], strides = [1, 1]} : vector<8x32xf32> to vector<1x32xf32>
    %8 = vector.extract_strided_slice %6 {offsets = [1, 0], sizes = [1, 32], strides = [1, 1]} : vector<8x32xf32> to vector<1x32xf32>
    %9 = vector.extract_strided_slice %6 {offsets = [2, 0], sizes = [1, 32], strides = [1, 1]} : vector<8x32xf32> to vector<1x32xf32>
    %10 = vector.extract_strided_slice %6 {offsets = [3, 0], sizes = [1, 32], strides = [1, 1]} : vector<8x32xf32> to vector<1x32xf32>
    %11 = vector.extract_strided_slice %6 {offsets = [4, 0], sizes = [1, 32], strides = [1, 1]} : vector<8x32xf32> to vector<1x32xf32>
    %12 = vector.extract_strided_slice %6 {offsets = [5, 0], sizes = [1, 32], strides = [1, 1]} : vector<8x32xf32> to vector<1x32xf32>
    %cst = arith.constant dense<0.000000e+00> : vector<16xf32>
    %13 = vector.multi_reduction <add>, %4, %cst [1] : vector<16x32xf32> to vector<16xf32>
    %14 = vector.shape_cast %13 : vector<16xf32> to vector<16x1xf32>
    %cst_6 = arith.constant 3.200000e+01 : f32
    %15 = vector.broadcast %cst_6 : f32 to vector<16x1xf32>
    %16 = arith.divf %14, %15 : vector<16x1xf32>
    %17 = vector.broadcast %16 : vector<16x1xf32> to vector<16x32xf32>
    %18 = arith.subf %4, %17 : vector<16x32xf32>
    %19 = arith.mulf %18, %18 : vector<16x32xf32>
    %cst_7 = arith.constant dense<0.000000e+00> : vector<16xf32>
    %20 = vector.multi_reduction <add>, %19, %cst_7 [1] : vector<16x32xf32> to vector<16xf32>
    %21 = vector.shape_cast %20 : vector<16xf32> to vector<16x1xf32>
    %cst_8 = arith.constant 3.200000e+01 : f32
    %22 = vector.broadcast %cst_8 : f32 to vector<16x1xf32>
    %23 = arith.divf %21, %22 : vector<16x1xf32>
    %cst_9 = arith.constant 9.99999974E-6 : f32
    %24 = vector.broadcast %cst_9 : f32 to vector<16x1xf32>
    %25 = arith.addf %23, %24 : vector<16x1xf32>
    %26 = math.rsqrt %25 : vector<16x1xf32>
    %27 = vector.broadcast %26 : vector<16x1xf32> to vector<16x32xf32>
    %28 = arith.mulf %18, %27 : vector<16x32xf32>
    %29 = vector.broadcast %7 : vector<1x32xf32> to vector<16x32xf32>
    %30 = arith.mulf %28, %29 : vector<16x32xf32>
    %31 = vector.broadcast %8 : vector<1x32xf32> to vector<16x32xf32>
    %32 = arith.addf %30, %31 : vector<16x32xf32>
    %33 = arith.truncf %32 : vector<16x32xf32> to vector<16x32xbf16>
    %c0_10 = arith.constant 0 : index
    %c0_11 = arith.constant 0 : index
    %c0_12 = arith.constant 0 : index
    %c0_13 = arith.constant 0 : index
    %34 = vector.load %arg4[%c0_10, %c0_11, %c0_12, %c0_13] : memref<1x3x32x32xbf16, #tpu.memory_space<vmem>>, vector<1x1x32x32xbf16>
    %35 = vector.shape_cast %34 : vector<1x1x32x32xbf16> to vector<32x32xbf16>
    %cst_14 = arith.constant dense<0.000000e+00> : vector<16x32xf32>
    %36 = tpu.matmul %33, %35, %cst_14 {dimension_numbers = #tpu.dot_dimension_numbers<[1], [0], [0], [1], [0, 0, 1, 1], [], []>} : vector<16x32xbf16>, vector<32x32xbf16>, vector<16x32xf32> -> vector<16x32xf32>
    %cst_15 = arith.constant 0.353553385 : f32
    %37 = vector.broadcast %cst_15 : f32 to vector<16x32xf32>
    %38 = arith.mulf %36, %37 : vector<16x32xf32>
    %c0_16 = arith.constant 0 : index
    %c1 = arith.constant 1 : index
    %c0_17 = arith.constant 0 : index
    %c0_18 = arith.constant 0 : index
    %39 = vector.load %arg4[%c0_16, %c1, %c0_17, %c0_18] : memref<1x3x32x32xbf16, #tpu.memory_space<vmem>>, vector<1x1x32x32xbf16>
    %40 = vector.shape_cast %39 : vector<1x1x32x32xbf16> to vector<32x32xbf16>
    %cst_19 = arith.constant dense<0.000000e+00> : vector<16x32xf32>
    %41 = tpu.matmul %33, %40, %cst_19 {dimension_numbers = #tpu.dot_dimension_numbers<[1], [0], [0], [1], [0, 0, 1, 1], [], []>} : vector<16x32xbf16>, vector<32x32xbf16>, vector<16x32xf32> -> vector<16x32xf32>
    %c0_20 = arith.constant 0 : index
    %c2 = arith.constant 2 : index
    %c0_21 = arith.constant 0 : index
    %c0_22 = arith.constant 0 : index
    %42 = vector.load %arg4[%c0_20, %c2, %c0_21, %c0_22] : memref<1x3x32x32xbf16, #tpu.memory_space<vmem>>, vector<1x1x32x32xbf16>
    %43 = vector.shape_cast %42 : vector<1x1x32x32xbf16> to vector<32x32xbf16>
    %cst_23 = arith.constant dense<0.000000e+00> : vector<16x32xf32>
    %44 = tpu.matmul %33, %43, %cst_23 {dimension_numbers = #tpu.dot_dimension_numbers<[1], [0], [0], [1], [0, 0, 1, 1], [], []>} : vector<16x32xbf16>, vector<32x32xbf16>, vector<16x32xf32> -> vector<16x32xf32>
    %45 = vector.shape_cast %38 : vector<16x32xf32> to vector<2x8x32xf32>
    %46 = vector.extract_strided_slice %45 {offsets = [0, 0, 0], sizes = [2, 8, 8], strides = [1, 1, 1]} : vector<2x8x32xf32> to vector<2x8x8xf32>
    %47 = vector.extract_strided_slice %45 {offsets = [0, 0, 8], sizes = [2, 8, 8], strides = [1, 1, 1]} : vector<2x8x32xf32> to vector<2x8x8xf32>
    %48 = vector.extract_strided_slice %45 {offsets = [0, 0, 16], sizes = [2, 8, 8], strides = [1, 1, 1]} : vector<2x8x32xf32> to vector<2x8x8xf32>
    %49 = vector.extract_strided_slice %45 {offsets = [0, 0, 24], sizes = [2, 8, 8], strides = [1, 1, 1]} : vector<2x8x32xf32> to vector<2x8x8xf32>
    %50 = tpu.concatenate %46, %47, %48, %49 in 0 : vector<2x8x8xf32>, vector<2x8x8xf32>, vector<2x8x8xf32>, vector<2x8x8xf32> -> vector<8x8x8xf32>
    %51 = arith.truncf %50 : vector<8x8x8xf32> to vector<8x8x8xbf16>
    %52 = vector.shape_cast %41 : vector<16x32xf32> to vector<2x8x32xf32>
    %53 = vector.extract_strided_slice %52 {offsets = [0, 0, 0], sizes = [2, 8, 8], strides = [1, 1, 1]} : vector<2x8x32xf32> to vector<2x8x8xf32>
    %54 = vector.extract_strided_slice %52 {offsets = [0, 0, 8], sizes = [2, 8, 8], strides = [1, 1, 1]} : vector<2x8x32xf32> to vector<2x8x8xf32>
    %55 = vector.extract_strided_slice %52 {offsets = [0, 0, 16], sizes = [2, 8, 8], strides = [1, 1, 1]} : vector<2x8x32xf32> to vector<2x8x8xf32>
    %56 = vector.extract_strided_slice %52 {offsets = [0, 0, 24], sizes = [2, 8, 8], strides = [1, 1, 1]} : vector<2x8x32xf32> to vector<2x8x8xf32>
    %57 = tpu.concatenate %53, %54, %55, %56 in 0 : vector<2x8x8xf32>, vector<2x8x8xf32>, vector<2x8x8xf32>, vector<2x8x8xf32> -> vector<8x8x8xf32>
    %58 = arith.truncf %57 : vector<8x8x8xf32> to vector<8x8x8xbf16>
    %59 = vector.shape_cast %44 : vector<16x32xf32> to vector<2x8x32xf32>
    %60 = vector.extract_strided_slice %59 {offsets = [0, 0, 0], sizes = [2, 8, 8], strides = [1, 1, 1]} : vector<2x8x32xf32> to vector<2x8x8xf32>
    %61 = vector.extract_strided_slice %59 {offsets = [0, 0, 8], sizes = [2, 8, 8], strides = [1, 1, 1]} : vector<2x8x32xf32> to vector<2x8x8xf32>
    %62 = vector.extract_strided_slice %59 {offsets = [0, 0, 16], sizes = [2, 8, 8], strides = [1, 1, 1]} : vector<2x8x32xf32> to vector<2x8x8xf32>
    %63 = vector.extract_strided_slice %59 {offsets = [0, 0, 24], sizes = [2, 8, 8], strides = [1, 1, 1]} : vector<2x8x32xf32> to vector<2x8x8xf32>
    %64 = tpu.concatenate %60, %61, %62, %63 in 0 : vector<2x8x8xf32>, vector<2x8x8xf32>, vector<2x8x8xf32>, vector<2x8x8xf32> -> vector<8x8x8xf32>
    %65 = arith.truncf %64 : vector<8x8x8xf32> to vector<8x8x8xbf16>
    "tpu.trace_start"() <{level = 10 : i32, message = "gid,gjd->gij"}> : () -> ()
    %cst_24 = arith.constant dense<0.000000e+00> : vector<8x8x8xf32>
    %66 = tpu.matmul %51, %58, %cst_24 {dimension_numbers = #tpu.dot_dimension_numbers<[2], [2], [1], [1], [0, 0, 0, 1, 1, 1], [0], [0]>} : vector<8x8x8xbf16>, vector<8x8x8xbf16>, vector<8x8x8xf32> -> vector<8x8x8xf32>
    "tpu.trace_stop"() : () -> ()
    %cst_25 = arith.constant dense<0xFF800000> : vector<8x8xf32>
    %67 = vector.multi_reduction <maximumf>, %66, %cst_25 [2] : vector<8x8x8xf32> to vector<8x8xf32>
    %68 = vector.shape_cast %67 : vector<8x8xf32> to vector<8x8x1xf32>
    %69 = vector.broadcast %68 : vector<8x8x1xf32> to vector<8x8x8xf32>
    %70 = arith.subf %66, %69 : vector<8x8x8xf32>
    %71 = math.exp %70 : vector<8x8x8xf32>
    %cst_26 = arith.constant dense<0.000000e+00> : vector<8x8xf32>
    %72 = vector.multi_reduction <add>, %71, %cst_26 [2] : vector<8x8x8xf32> to vector<8x8xf32>
    %73 = vector.shape_cast %72 : vector<8x8xf32> to vector<8x8x1xf32>
    %74 = tpu.reciprocal %73 {approx = true} : vector<8x8x1xf32> -> vector<8x8x1xf32>
    %75 = vector.broadcast %74 : vector<8x8x1xf32> to vector<8x8x8xf32>
    %76 = arith.mulf %71, %75 : vector<8x8x8xf32>
    %77 = arith.truncf %76 : vector<8x8x8xf32> to vector<8x8x8xbf16>
    "tpu.trace_start"() <{level = 10 : i32, message = "gij,gjd->gid"}> : () -> ()
    %cst_27 = arith.constant dense<0.000000e+00> : vector<8x8x8xf32>
    %78 = tpu.matmul %77, %65, %cst_27 {dimension_numbers = #tpu.dot_dimension_numbers<[2], [1], [1], [2], [0, 0, 0, 1, 1, 2], [0], [0]>} : vector<8x8x8xbf16>, vector<8x8x8xbf16>, vector<8x8x8xf32> -> vector<8x8x8xf32>
    "tpu.trace_stop"() : () -> ()
    %79 = vector.extract_strided_slice %78 {offsets = [0, 0, 0], sizes = [2, 8, 8], strides = [1, 1, 1]} : vector<8x8x8xf32> to vector<2x8x8xf32>
    %80 = vector.extract_strided_slice %78 {offsets = [2, 0, 0], sizes = [2, 8, 8], strides = [1, 1, 1]} : vector<8x8x8xf32> to vector<2x8x8xf32>
    %81 = vector.extract_strided_slice %78 {offsets = [4, 0, 0], sizes = [2, 8, 8], strides = [1, 1, 1]} : vector<8x8x8xf32> to vector<2x8x8xf32>
    %82 = vector.extract_strided_slice %78 {offsets = [6, 0, 0], sizes = [2, 8, 8], strides = [1, 1, 1]} : vector<8x8x8xf32> to vector<2x8x8xf32>
    %83 = tpu.concatenate %79, %80, %81, %82 in 2 : vector<2x8x8xf32>, vector<2x8x8xf32>, vector<2x8x8xf32>, vector<2x8x8xf32> -> vector<2x8x32xf32>
    %84 = vector.shape_cast %83 : vector<2x8x32xf32> to vector<16x32xf32>
    %85 = arith.truncf %84 : vector<16x32xf32> to vector<16x32xbf16>
    %c0_28 = arith.constant 0 : index
    %c0_29 = arith.constant 0 : index
    %c0_30 = arith.constant 0 : index
    %86 = vector.load %arg5[%c0_28, %c0_29, %c0_30] : memref<1x32x32xbf16, #tpu.memory_space<vmem>>, vector<1x32x32xbf16>
    %87 = vector.shape_cast %86 : vector<1x32x32xbf16> to vector<32x32xbf16>
    %cst_31 = arith.constant dense<0.000000e+00> : vector<16x32xf32>
    %88 = tpu.matmul %85, %87, %cst_31 {dimension_numbers = #tpu.dot_dimension_numbers<[1], [0], [0], [1], [0, 0, 1, 1], [], []>} : vector<16x32xbf16>, vector<32x32xbf16>, vector<16x32xf32> -> vector<16x32xf32>
    %89 = arith.addf %4, %88 : vector<16x32xf32>
    %90 = vector.broadcast %9 : vector<1x32xf32> to vector<16x32xf32>
    %91 = arith.addf %89, %90 : vector<16x32xf32>
    %cst_32 = arith.constant dense<0.000000e+00> : vector<16xf32>
    %92 = vector.multi_reduction <add>, %91, %cst_32 [1] : vector<16x32xf32> to vector<16xf32>
    %93 = vector.shape_cast %92 : vector<16xf32> to vector<16x1xf32>
    %cst_33 = arith.constant 3.200000e+01 : f32
    %94 = vector.broadcast %cst_33 : f32 to vector<16x1xf32>
    %95 = arith.divf %93, %94 : vector<16x1xf32>
    %96 = vector.broadcast %95 : vector<16x1xf32> to vector<16x32xf32>
    %97 = arith.subf %91, %96 : vector<16x32xf32>
    %98 = arith.mulf %97, %97 : vector<16x32xf32>
    %cst_34 = arith.constant dense<0.000000e+00> : vector<16xf32>
    %99 = vector.multi_reduction <add>, %98, %cst_34 [1] : vector<16x32xf32> to vector<16xf32>
    %100 = vector.shape_cast %99 : vector<16xf32> to vector<16x1xf32>
    %cst_35 = arith.constant 3.200000e+01 : f32
    %101 = vector.broadcast %cst_35 : f32 to vector<16x1xf32>
    %102 = arith.divf %100, %101 : vector<16x1xf32>
    %cst_36 = arith.constant 9.99999974E-6 : f32
    %103 = vector.broadcast %cst_36 : f32 to vector<16x1xf32>
    %104 = arith.addf %102, %103 : vector<16x1xf32>
    %105 = math.rsqrt %104 : vector<16x1xf32>
    %106 = vector.broadcast %105 : vector<16x1xf32> to vector<16x32xf32>
    %107 = arith.mulf %97, %106 : vector<16x32xf32>
    %108 = vector.broadcast %10 : vector<1x32xf32> to vector<16x32xf32>
    %109 = arith.mulf %107, %108 : vector<16x32xf32>
    %110 = vector.broadcast %11 : vector<1x32xf32> to vector<16x32xf32>
    %111 = arith.addf %109, %110 : vector<16x32xf32>
    %112 = arith.truncf %111 : vector<16x32xf32> to vector<16x32xbf16>
    %c0_37 = arith.constant 0 : index
    %c0_38 = arith.constant 0 : index
    %c0_39 = arith.constant 0 : index
    %113 = vector.load %arg7[%c0_37, %c0_38, %c0_39] : memref<1x32x64xbf16, #tpu.memory_space<vmem>>, vector<1x32x64xbf16>
    %114 = vector.shape_cast %113 : vector<1x32x64xbf16> to vector<32x64xbf16>
    %cst_40 = arith.constant dense<0.000000e+00> : vector<16x64xf32>
    %115 = tpu.matmul %112, %114, %cst_40 {dimension_numbers = #tpu.dot_dimension_numbers<[1], [0], [0], [1], [0, 0, 1, 1], [], []>} : vector<16x32xbf16>, vector<32x64xbf16>, vector<16x64xf32> -> vector<16x64xf32>
    %c0_41 = arith.constant 0 : index
    %c0_42 = arith.constant 0 : index
    %c0_43 = arith.constant 0 : index
    %116 = vector.load %arg6[%c0_41, %c0_42, %c0_43] : memref<1x1x64xf32, #tpu.memory_space<vmem>>, vector<1x1x64xf32>
    %117 = vector.shape_cast %116 : vector<1x1x64xf32> to vector<1x64xf32>
    %118 = vector.broadcast %117 : vector<1x64xf32> to vector<16x64xf32>
    %119 = arith.addf %115, %118 : vector<16x64xf32>
    %cst_44 = arith.constant 5.000000e-01 : f32
    %120 = vector.broadcast %cst_44 : f32 to vector<16x64xf32>
    %121 = arith.mulf %120, %119 : vector<16x64xf32>
    %cst_45 = arith.constant 4.471500e-02 : f32
    %122 = vector.broadcast %cst_45 : f32 to vector<16x64xf32>
    %123 = arith.mulf %122, %119 : vector<16x64xf32>
    %124 = arith.mulf %123, %119 : vector<16x64xf32>
    %125 = arith.mulf %124, %119 : vector<16x64xf32>
    %126 = arith.addf %119, %125 : vector<16x64xf32>
    %cst_46 = arith.constant 0.797884583 : f32
    %127 = vector.broadcast %cst_46 : f32 to vector<16x64xf32>
    %128 = arith.mulf %127, %126 : vector<16x64xf32>
    %129 = math.tanh %128 : vector<16x64xf32>
    %cst_47 = arith.constant 1.000000e+00 : f32
    %130 = vector.broadcast %cst_47 : f32 to vector<16x64xf32>
    %131 = arith.addf %130, %129 : vector<16x64xf32>
    %132 = arith.mulf %121, %131 : vector<16x64xf32>
    %133 = arith.truncf %132 : vector<16x64xf32> to vector<16x64xbf16>
    %c0_48 = arith.constant 0 : index
    %c0_49 = arith.constant 0 : index
    %c0_50 = arith.constant 0 : index
    %134 = vector.load %arg8[%c0_48, %c0_49, %c0_50] : memref<1x64x32xbf16, #tpu.memory_space<vmem>>, vector<1x64x32xbf16>
    %135 = vector.shape_cast %134 : vector<1x64x32xbf16> to vector<64x32xbf16>
    %cst_51 = arith.constant dense<0.000000e+00> : vector<16x32xf32>
    %136 = tpu.matmul %133, %135, %cst_51 {dimension_numbers = #tpu.dot_dimension_numbers<[1], [0], [0], [1], [0, 0, 1, 1], [], []>} : vector<16x64xbf16>, vector<64x32xbf16>, vector<16x32xf32> -> vector<16x32xf32>
    %137 = vector.broadcast %12 : vector<1x32xf32> to vector<16x32xf32>
    %138 = arith.addf %136, %137 : vector<16x32xf32>
    %139 = arith.addf %91, %138 : vector<16x32xf32>
    %140 = vector.shape_cast %139 : vector<16x32xf32> to vector<2x8x32xf32>
    %c0_52 = arith.constant 0 : index
    %c0_53 = arith.constant 0 : index
    %c0_54 = arith.constant 0 : index
    %141 = vector.load %arg9[%c0_52, %c0_53, %c0_54] : memref<2x8x32xf32, #tpu.memory_space<vmem>>, vector<2x8x32xf32>
    tpu.vector_store %arg9[%c0_52, %c0_53, %c0_54], %140 {strides = array<i32>} : memref<2x8x32xf32, #tpu.memory_space<vmem>>, vector<2x8x32xf32>,
    return
  }
  func.func @transform_0(%arg0: i32, %arg1: i32) -> (i32, i32, i32) {
    %c0_i32 = arith.constant 0 : i32
    %c0_i32_0 = arith.constant 0 : i32
    %c0_i32_1 = arith.constant 0 : i32
    return %arg0, %c0_i32, %c0_i32_0 : i32, i32, i32
  }
  func.func @transform_1(%arg0: i32, %arg1: i32) -> (i32, i32, i32) {
    %c0_i32 = arith.constant 0 : i32
    %c0_i32_0 = arith.constant 0 : i32
    %c0_i32_1 = arith.constant 0 : i32
    return %arg1, %c0_i32, %c0_i32_0 : i32, i32, i32
  }
  func.func @transform_2(%arg0: i32, %arg1: i32) -> (i32, i32, i32, i32) {
    %c0_i32 = arith.constant 0 : i32
    %c0_i32_0 = arith.constant 0 : i32
    %c0_i32_1 = arith.constant 0 : i32
    %c0_i32_2 = arith.constant 0 : i32
    return %arg1, %c0_i32, %c0_i32_0, %c0_i32_1 : i32, i32, i32, i32
  }
  func.func @transform_3(%arg0: i32, %arg1: i32) -> (i32, i32, i32) {
    %c0_i32 = arith.constant 0 : i32
    %c0_i32_0 = arith.constant 0 : i32
    %c0_i32_1 = arith.constant 0 : i32
    return %arg1, %c0_i32, %c0_i32_0 : i32, i32, i32
  }
  func.func @transform_4(%arg0: i32, %arg1: i32) -> (i32, i32, i32) {
    %c0_i32 = arith.constant 0 : i32
    %c0_i32_0 = arith.constant 0 : i32
    %c0_i32_1 = arith.constant 0 : i32
    return %arg1, %c0_i32, %c0_i32_0 : i32, i32, i32
  }
  func.func @transform_5(%arg0: i32, %arg1: i32) -> (i32, i32, i32) {
    %c0_i32 = arith.constant 0 : i32
    %c0_i32_0 = arith.constant 0 : i32
    %c0_i32_1 = arith.constant 0 : i32
    return %arg1, %c0_i32, %c0_i32_0 : i32, i32, i32
  }
  func.func @transform_6(%arg0: i32, %arg1: i32) -> (i32, i32, i32) {
    %c0_i32 = arith.constant 0 : i32
    %c0_i32_0 = arith.constant 0 : i32
    %c0_i32_1 = arith.constant 0 : i32
    return %arg1, %c0_i32, %c0_i32_0 : i32, i32, i32
  }
  func.func @transform_7(%arg0: i32, %arg1: i32) -> (i32, i32, i32) {
    %c0_i32 = arith.constant 0 : i32
    %c0_i32_0 = arith.constant 0 : i32
    %c0_i32_1 = arith.constant 0 : i32
    return %arg0, %c0_i32, %c0_i32_0 : i32, i32, i32
  }
}

</mosaic_0001>

<bundles_post_ra>
// kernel: tpu_custom_call.1
= control target key start
LH: loop header
LB: loop body
LE: loop exit
PB: predicated region body
PF: predicated region fallthrough
CT: control target
= control target key end

     0   :  { %s2715_s0 = inlined_call_operand.hbm [shape: f32[4,8,32], index: 0, kind: input, shape index: {}]   ;;  %s2716_s1 = inlined_call_operand.hbm [shape: f32[2,8,32], index: 1, kind: input, shape index: {}]   ;;  %s2717_s2 = inlined_call_operand.vmem [shape: bf16[2,3,32,32], index: 2, kind: input, shape index: {}]   ;;  %s2718_s3 = inlined_call_operand.hbm [shape: bf16[2,32,32], index: 3, kind: input, shape index: {}]   ;;  %s2719_s4 = inlined_call_operand.vmem [shape: f32[2,1,64], index: 4, kind: input, shape index: {}]   ;;  %s2720_s5 = inlined_call_operand.hbm [shape: bf16[2,32,64], index: 5, kind: input, shape index: {}]   ;;  %s2721_s6 = inlined_call_operand.vmem [shape: bf16[2,64,32], index: 6, kind: input, shape index: {}]   ;;  %s2722_s7 = inlined_call_operand.hbm [shape: f32[4,8,32], index: 7, kind: output, shape index: {}]  }
   0x1   :  { %2739 = sst [smem:[#allocation28_spill]] %s2715_s0 }
   0x2   :  { %2740 = sst [smem:[#allocation29_spill]] %s2716_s1 }
   0x3   :  { %2741 = sst [smem:[#allocation30_spill]] %s2717_s2 }
   0x4   :  { %2742 = sst [smem:[#allocation31_spill]] %s2718_s3 }
   0x5   :  { %2743 = sst [smem:[#allocation32_spill]] %s2719_s4 }
   0x6   :  { %2744 = sst [smem:[#allocation33_spill]] %s2721_s6 }
   0x7   :  { %2745 = sst [smem:[#allocation34_spill]] %s2722_s7 }
   0x8   :  { %12 = vsyncpa [#allocation3], 0 }
   0x9   :  { %14 = vsyncpa [#allocation3 + $0x1], 0 }
   0xa   :  { %15 = vsyncpa [#allocation6], 0 }
   0xb   :  { %17 = vsyncpa [#allocation6 + $0x1], 0 }
   0xc   :  { %18 = vsyncpa [#allocation9], 0 }
   0xd   :  { %20 = vsyncpa [#allocation9 + $0x1], 0 }
   0xe   :  { %21 = vsyncpa [#allocation4], 0 }
   0xf   :  { %23 = vsyncpa [#allocation4 + $0x1], 0  ;;  %s2225_s24 = smov 0   ;;  %s2227_s25 = smov 0  }
  0x10   :  { %s2229_s26 = smov 0   ;;  %s2231_s27 = smov 0  }
  0x11   :  { %s2233_s28 = smov 0   ;;  %s2235_s29 = smov 0  }
  0x12   :  { %s2237_s30 = smov 0   ;;  %s2239_s8 = smov 0  }
  0x13   :  { %s2241_s9 = smov 0   ;;  %s2243_s10 = smov 0  }
  0x14   :  { %s2245_s11 = smov 0  }
  0x15 LB: > { %2746 = sst [smem:[#allocation15_spill]] %s2139_s26  ;;  %s2281_s12 = sadd.s32 4294967295, %s2171_s11   ;;  %s2171_s11 = sphi %s2245_s11, %s29_s11   ;;  %s2167_s10 = sphi %s2243_s10, %s2796_s10   ;;  %s2163_s9 = sphi %s2241_s9, %s2802_s9   ;;  %s2159_s8 = sphi %s2239_s8, %s2794_s8   ;;  %s2155_s30 = sphi %s2237_s30, %s2801_s30   ;;  %s2151_s29 = sphi %s2235_s29, %s2793_s29   ;;  %s2147_s28 = sphi %s2233_s28, %s2800_s28   ;;  %s2143_s27 = sphi %s2231_s27, %s2799_s27   ;;  %s2139_s26 = sphi %s2229_s26, %s2791_s26   ;;  %s2135_s25 = sphi %s2227_s25, %s2798_s25   ;;  %s2131_s24 = sphi %s2225_s24, %s2797_s24  }
  0x16   : > { %2747 = sst [smem:[#allocation16_spill]] %s2143_s27  ;;  %s1575_s13 = sadd.s32 4294967294, %s2171_s11  }
  0x17   : > { %2748 = sst [smem:[#allocation17_spill]] %s2151_s29  ;;  %s38_s14 = sadd.s32 1, %s2163_s9 }
  0x18   : > { %2749 = sst [smem:[#allocation18_spill]] %s2155_s30  ;;  %p2286_p0 = scmp.ge.s32.totalorder %s38_s14, 2 }
  0x19   : > { %2750 = sst [smem:[#allocation19_spill]] %s2159_s8  ;;  %p55_p1 = scmp.ne.s32.totalorder %s2151_s29, %s2147_s28 }
  0x1a   : > { %2751 = sst [smem:[#allocation20_spill]] %s2167_s10  ;;  %p56_p2 = scmp.eq.s32.totalorder %s2171_s11, 0 }
  0x1b   : > { %2752 = sst [smem:[#allocation21_spill]] %s2171_s11  ;;  %p2723_p3 = scmp.ne.s32.totalorder %s2147_s28, %s2143_s27 }
  0x1c   : > { %s2804_s14 = smov (%p2286_p0, %s38_s14), 0  ;;  %p2302_p4 = por %p56_p2, %p55_p1 }
  0x1d   : > { %2754 = sst [smem:[#allocation22_spill]] %s2804_s14  ;;  %p62_p5 = scmp.eq.s32.totalorder %s2281_s12, 0 }
  0x1e   : > { %s71_s18 = ssub.s32 %s2163_s9, %s2804_s14  ;;  %s74_s19 = sadd.s32 1, %s2139_s26 }
  0x1f   : > { %p2313_p6 = por %p62_p5, %p2723_p3  ;;  %p72_p7 = scmp.eq.s32.totalorder %s71_s18, 0 }
  0x20   : > { %p81_p8 = scmp.ne.s32.totalorder %s2139_s26, %s2135_s25  ;;  %p87_p9 = scmp.ne.s32.totalorder %s2135_s25, %s2131_s24 }
  0x21   : > { %s2756_s20 = scalar_select %p2313_p6, 1, 0 }
  0x22   : > { %s2322_s21 = scalar_select %p72_p7, %s2139_s26, %s74_s19  }
  0x23   : > { %p2324_p10 = por %p81_p8, %p56_p2  ;;  %p2328_p11 = por %p87_p9, %p62_p5 }
  0x24   : > { %2757 = sst [smem:[#allocation23_spill]] %s2322_s21  ;;  %p241_p12 = scmp.eq.s32.totalorder %s2281_s12, 3 }
  0x25   : > { %p247_p13 = scmp.eq.s32.totalorder %s1575_s13, 3  ;;  %p1737_p3 = scmp.lt.s32.totalorder %s2171_s11, 4 }
  0x26   : > { %p2337_p6 = por %p241_p12, %p55_p1  ;;  %p2762_p7 = scmp.ne.s32.totalorder %s2147_s28, %s2143_s27 }
  0x27   : > { %p2352_p5 = pnand %p1737_p3, %p2302_p4  ;;  %s289_s15 = sand.u32 1, %s2171_s11  }
  0x28   : > { %s2760_s18 = scalar_select %p2337_p6, 1, 0 }
  0x29   : > { %p2344_p2 = por %p247_p13, %p2762_p7  ;;  %s2358_s13 = sand.u32 1, %s2139_s26  }
  0x2a   : > { %2761 = sst [smem:[#allocation24_spill]] %s2760_s18  ;;  %s1581_s14 = sshll.u32 %s2358_s13, 3 }
  0x2b   : > { %s2763_s24 = scalar_select %p2344_p2, 1, 0 }
  0x2c   : > { %s1582_s21 = sshll.u32 %s2163_s9, 3  ;;  %s2766_s1 = sld [smem:[#allocation29_spill]] }
  0x2d   : > { %2764 = sst [smem:[#allocation25_spill]] %s2763_s24  ;;  %s293_s17 = scalar_lea.vmem [#allocation5], %s1581_s14 }
  0x2e   : > { %s301_s18 = sshll.u32 %s293_s17, 4  ;;  %p2369_p1 = pnand %p1737_p3, %p2324_p10  ;;  %s302_s18 = int_to_ptr.vmem [resolvable:$true] %s301_s18 }
  0x2f   : > { %s2732_s7 = sshll.u32 %s2358_s13, 4  ;;  %p1589_p4 = scmp.ge.s32.totalorder %s2171_s11, 1 }
  0x30   : > { %s320_s14 = scalar_lea.vmem [#allocation7], %s2732_s7  ;;  %p372_p8 = scmp.lt.s32.totalorder %s2171_s11, 5 }
  0x31   : > { %s41_s17 = sadd.s32 1, %s2167_s10  ;;  %s2769_s0 = sld [smem:[#allocation28_spill]] }
  0x32   : > { %s297_s24 = scalar_lea.hbm %s2766_s1, %s1582_s21  ;;  %s2375_s21 = scalar_lea.sflag [#allocation6], %s289_s15 }
  0x33   : > { %s299_s8 = sshll.u32 %s297_s24, 4  ;;  %s328_s24 = sshll.u32 %s320_s14, 4  ;;  %s300_s8 = int_to_ptr.hbm [resolvable:$true] %s299_s8  ;;  %s2383_s24 = int_to_ptr.vmem [resolvable:$true] %s328_s24 }
  0x34   : > { %1726 = dma.hbm_to_vmem [thread:$0]  (!%p2369_p1), %s300_s8, 128, %s302_s18, %s2375_s21  }
  0x35   : > { %p2386_p3 = pnand %p1589_p4, %p372_p8  ;;  %s2806_s17 = smov (!%p2286_p0, %s41_s17), %s2167_s10 }
  0x36   : > { %s267_s15 = sand.u32 1, %s2151_s29   ;;  %s1690_s8 = sshll.u32 %s2167_s10, 4 }
  0x37   : > { %p43_p9 = scmp.ge.s32.totalorder %s2806_s17, 2  ;;  %s1578_s18 = sshll.u32 %s267_s15, 4 }
  0x38   : > { %s276_s27 = scalar_lea.hbm %s2769_s0, %s1690_s8  ;;  %s271_s16 = scalar_lea.vmem [#allocation2], %s1578_s18 }
  0x39   : > { %s2808_s17 = smov (%p43_p9, %s2806_s17), 0  ;;  %s277_s1 = sshll.u32 %s276_s27, 4  ;;  %s278_s1 = int_to_ptr.hbm [resolvable:$true] %s277_s1 }
  0x3a   : > { %2770 = sst [smem:[#allocation26_spill]] %s2808_s17  ;;  %s45_s11 = ssub.s32 %s2167_s10, %s2808_s17 }
  0x3b   : > { %p46_p0 = scmp.eq.s32.totalorder %s45_s11, 0  ;;  %s279_s6 = sshll.u32 %s271_s16, 4  ;;  %s280_s6 = int_to_ptr.vmem [resolvable:$true] %s279_s6 }
  0x3c   : > { %s2771_s2 = sadd.s32 1, %s2151_s29  ;;  %s2773_s7 = sshll.u32 %s2163_s9, 4 }
  0x3d   : > { %s2406_s4 = scalar_select %p46_p0, %s2151_s29, %s2771_s2  }
  0x3e   : > { %s2774_s3 = sld [smem:[#allocation31_spill]]  ;;  %s268_s27 = scalar_lea.sflag [#allocation3], %s267_s15 }
  0x3f   : > { %2772 = sst [smem:[#allocation27_spill]] %s2406_s4  ;;  %s2173_s17 = smov 128  }
  0x40   : > { %s2174_s10 = smov 8   ;;  %s2175_s18 = smov 64  }
  0x41   : > { %1723 = dma.hbm_to_vmem [thread:$0]  (!%p2352_p5), %s278_s1, 256, %s280_s6, %s268_s27, %s2173_s17, %s2173_s17, %s2174_s10  }
  0x42   : > { %s2176_s16 = smov 4   ;;  %s2775_s2 = smov %s2773_s7 }
  0x43   : > { %s353_s30 = scalar_lea.hbm %s2720_s5, %s2775_s2  ;;  %s2776_s8 = sshll.u32 %s2358_s13, 4 }
  0x44   : > { %s325_s0 = scalar_lea.hbm %s2774_s3, %s2773_s7  ;;  %s348_s7 = scalar_lea.vmem [#allocation8], %s2776_s8 }
  0x45   : > { %s326_s11 = sshll.u32 %s325_s0, 4  ;;  %s356_s14 = sshll.u32 %s348_s7, 4  ;;  %s327_s11 = int_to_ptr.hbm [resolvable:$true] %s326_s11  ;;  %s357_s14 = int_to_ptr.vmem [resolvable:$true] %s356_s14 }
  0x46   : > { %1729 = dma.hbm_to_vmem [thread:$0]  (!%p2369_p1), %s327_s11, 256, %s2383_s24, %s2375_s21, %s2175_s18, %s2175_s18, %s2176_s16  }
  0x47   : > { %s354_s15 = sshll.u32 %s353_s30, 4  ;;  %s345_s3 = scalar_lea.sflag [#allocation9], %s2358_s13  ;;  %s355_s15 = int_to_ptr.hbm [resolvable:$true] %s354_s15 }
  0x48   : > { %1732 = dma.hbm_to_vmem [thread:$0]  (!%p2369_p1), %s355_s15, 256, %s357_s14, %s345_s3, %s2175_s18, %s2175_s18, %s2176_s16  }
  0x49   : > { %376 = sbr.rel (%p2386_p3) target bundleno = 2018 (0x7e2), region = 48  ;;  %s2432_s0 = sand.u32 (!%p2386_p3), 1, %s2147_s28  }
  0x4a   : > { %s1590_s1 = sshll.u32 (!%p2386_p3), %s2432_s0, 4  ;;  %s379_s4 = scalar_lea.sflag (!%p2386_p3), [#allocation3], %s2432_s0 }
  0x4b   : > { %s382_s6 = scalar_lea.vmem (!%p2386_p3), [#allocation2], %s1590_s1  ;;  %p2777_p10 = scmp.ne.s32.totalorder (!%p2386_p3), %s2756_s20, 0 }
  0x4e   : > { %2114 = dma.done.wait (%p2777_p10), %s379_s4, 256  }
  0x4f   : > { %2116 = vsyncadd (%p2777_p10), %s379_s4, 4294967040  ;;  %s388_s3 = sand.u32 1, %s2281_s12   ;;  %s390_s26 = sand.u32 1, %s2135_s25  }
  0x50   : > { %s1591_s29 = sshll.u32 %s390_s26, 3  ;;  %s389_s30 = scalar_lea.sflag [#allocation6], %s388_s3 }
  0x51   : > { %s2442_s10 = scalar_lea.vmem [#allocation5], %s1591_s29 }
  0x52   : > { %2118 = dma.done.wait (%p2328_p11), %s389_s30, 384  }
  0x53   : > { %2120 = vsyncadd (%p2328_p11), %s389_s30, 4294966912  ;;  %s1592_s19 = sshll.u32 %s390_s26, 4  ;;  %s409_s20 = scalar_lea.sflag [#allocation9], %s390_s26 }
  0x54   : > { %s2448_s13 = scalar_lea.vmem [#allocation7], %s1592_s19  ;;  %s2450_s21 = scalar_lea.vmem [#allocation8], %s1592_s19 }
  0x55   : > { %2122 = dma.done.wait (%p2328_p11), %s409_s20, 256  }
  0x56   : > { %2124 = vsyncadd (%p2328_p11), %s409_s20, 4294967040  ;;  %s2778_s12 = sld [smem:[#allocation18_spill]]  ;;  %s2476_s26 = scalar_lea.vmem [#allocation10], %s1590_s1 }
  0x57   : > { %s2779_s11 = sld [smem:[#allocation32_spill]] }
  0x58   : > { %s2780_s7 = sld [smem:[#allocation30_spill]] }
  0x59   : > { %s2781_s4 = sld [smem:[#allocation33_spill]] }
  0x5c   : > { %p473_p12 = scmp.lt.s32.totalorder %s2778_s12, 1  ;;  %p1598_p11 = scmp.ne.s32.totalorder %s2778_s12, 0 }
  0x5e   : > { %s2458_s24 = scalar_select %p473_p12, %s2778_s12, 1 }
  0x5f   : > { %491 = sbr.rel (%p1598_p11) target bundleno = 103 (0x67), region = 68 }
  0x60   : > { %s1709_s22 = smul.u32 48, %s2458_s24  ;;  %s480_s18 = scalar_lea.vmem %s2779_s11, %s2458_s24 }
  0x61   : > { %s1693_s16 = sshll.u32 %s2458_s24, 5 }
  0x62   : > { %s2469_s14 = scalar_lea.vmem %s2780_s7, %s1709_s22  ;;  %s2474_s3 = scalar_lea.vmem %s2781_s4, %s1693_s16 }
  0x64   : > { %v492_v0 = vld [vmem:[%s382_s6] sm:$0xff]  ;;  %vm494_vm0 = vcmask 261120   ;;  %v493_v1 = vld [vmem:[%s382_s6 + $0x8] sm:$0xff] }
  0x65   : > { %495 = vst.msk [vmem:[%s2476_s26] sm:$0xff] %vm494_vm0, %v492_v0 }
  0x66   : > { %496 = vst.msk [vmem:[%s2476_s26 + $0x8] sm:$0xff] %vm494_vm0, %v493_v1 }
  0x67 PF: > { %vm500_vm1 = vcmask 261120   ;;  %v2177_v6 = vmov 32.0   ;;  %v1695_v23 = vld [vmem:[%s2469_s14 + $0x8] sm:$0xff]  ;;  %v1697_v24 = vld [vmem:[%s2469_s14 + $0x18] sm:$0xff]  ;;  %v1694_v27 = vld [vmem:[%s2469_s14] sm:$0xff]  ;;  %vm740_vm9 = vcmask 64512  }
  0x68   : > { %1875 = vrcp.f32 %v2177_v6  ;;  %v1699_v25 = vld [vmem:[%s2469_s14 + $0x28] sm:$0xff]  ;;  %584 = vmatpush.bf16.msra.mxu0 %v1695_v23  ;;  %617 = vmatpush.bf16.msra.mxu1 %v1697_v24  ;;  %v1696_v28 = vld [vmem:[%s2469_s14 + $0x10] sm:$0xff]  ;;  %v1698_v30 = vld [vmem:[%s2469_s14 + $0x20] sm:$0xff]  ;;  %s2178_s1 = smov 112   ;;  %s2179_s6 = smov 104   ;;  %vm992_vm10 = vcmask 1043456  }
  0x69   : > { %648 = vmatpush.bf16.msra.mxu2 %v1699_v25  ;;  %v2508_v46 = vld [vmem:[%s2442_s10] sm:$0xff]  ;;  %s2180_s29 = smov 120   ;;  %s2181_s30 = smov 8   ;;  %vm1168_vm11 = vcmask 130048   ;;  %vm1171_vm12 = vcmask 195584  }
  0x6a   : > { %v552_v49 = vperm.slane %v2508_v46, 0  ;;  %v555_v54 = vperm.slane %v2508_v46, 1  ;;  %s2182_s10 = smov 16   ;;  %s2183_s19 = smov 24  }
  0x6b   : > { %s2783_s12 = sld [smem:[#allocation19_spill]]  ;;  %s1388_s2 = sshll.u32 %s2476_s26, 4  ;;  %s1389_s2 = int_to_ptr.vmem [resolvable:$true] %s1388_s2 }
  0x6c   : > { %v2482_v2 = vld [vmem:[%s2476_s26] sm:$0xff]  ;;  %585 = vmatpush.bf16.msra.mxu0 %v1694_v27  ;;  %618 = vmatpush.bf16.msra.mxu1 %v1696_v28  ;;  %s2785_s11 = sld [smem:[#allocation34_spill]]  ;;  %s1376_s7 = scalar_lea.sflag [#allocation4], %s2432_s0 }
  0x6d   : > { %v501_v3 = vsel %vm500_vm1, %v2482_v2, 0.0  ;;  %v2487_v4 = vld [vmem:[%s2476_s26 + $0x8] sm:$0xff]  ;;  %649 = vmatpush.bf16.msra.mxu2 %v1698_v30 }
  0x6e   : > { %502 = vadd.xlane.f32.xlu0 %v501_v3  ;;  %v504_v5 = vsel %vm500_vm1, %v2487_v4, 0.0  ;;  %v1876_v7 = vpop.eup %1875 }
  0x6f   : > { %v508_v8 = vmul.f32 32.0, %v1876_v7  ;;  %vm512_vm2 = vweird.f32 %v1876_v7 }
  0x71   : > { %v509_v9 = vsub.f32 1.0, %v508_v8  ;;  %s1708_s24 = sshll.u32 %s2783_s12, 4 }
  0x72   : > { %s1387_s16 = scalar_lea.hbm %s2785_s11, %s1708_s24 }
  0x73   : > { %v510_v10 = vmul.f32 %v1876_v7, %v509_v9  ;;  %s1390_s8 = sshll.u32 %s1387_s16, 4  ;;  %s1391_s8 = int_to_ptr.hbm [resolvable:$true] %s1390_s8 }
  0x74   : > { %s2055_s14 = sshra.s32 %s1391_s8, 4  ;;  %s2056_s14 = int_to_ptr.hbm [resolvable:$true] %s2055_s14 }
  0x75   : > { %v511_v11 = vadd.f32 %v1876_v7, %v510_v10  ;;  %s2057_s23 = scalar_lea.hbm %s2056_s14, 16 }
  0x76   : > { %505 = vadd.xlane.f32.xlu0 %v504_v5  ;;  %p2058_p13 = scmp.ne.s32.totalorder %s2056_s14, %s2057_s23 }
  0x77   : > { %v2491_v12 = vsel %vm512_vm2, %v1876_v7, %v511_v11 }
  0x78   : > { %p2059_p7 = pnand %p2058_p13, %p2337_p6 }
  0x7a   : > { %p2060_p5 = pneg %p2059_p7 }
  0xe1   : > { %v503_v13 = vpop.xlane.xlu0 %502 }
  0xe2   : > { %v514_v14 = vmul.f32 %v2491_v12, %v503_v13 }
  0xe4   : > { %v516_v15 = vsub.f32 %v2482_v2, %v514_v14 }
  0xe6   : > { %v518_v16 = vmul.f32 %v516_v15, %v516_v15 }
  0xe8   : > { %v520_v17 = vsel %vm500_vm1, %v518_v16, 0.0 }
  0xe9   : > { %521 = vadd.xlane.f32.xlu1 %v520_v17  ;;  %v506_v18 = vpop.xlane.xlu0 %505 }
  0xea   : > { %v515_v19 = vmul.f32 %v2491_v12, %v506_v18 }
  0xec   : > { %v517_v20 = vsub.f32 %v2487_v4, %v515_v19 }
  0xee   : > { %v519_v21 = vmul.f32 %v517_v20, %v517_v20 }
  0xf0   : > { %v523_v22 = vsel %vm500_vm1, %v519_v21, 0.0 }
  0xf1   : > { %524 = vadd.xlane.f32.xlu1 %v523_v22 }
 0x15c   : > { %v522_v26 = vpop.xlane.xlu1 %521 }
 0x15d   : > { %v526_v29 = vmul.f32 %v522_v26, %v2491_v12 }
 0x15f   : > { %v528_v31 = vadd.f32 1e-05, %v526_v29 }
 0x161   : > { %1877 = vrsqrt.f32 %v528_v31  ;;  %vm536_vm4 = vweird.f32 %v528_v31 }
 0x164   : > { %v525_v32 = vpop.xlane.xlu1 %524 }
 0x165   : > { %v527_v33 = vmul.f32 %v525_v32, %v2491_v12 }
 0x167   : > { %v1878_v34 = vpop.eup %1877  ;;  %v529_v35 = vadd.f32 1e-05, %v527_v33 }
 0x168   : > { %v531_v36 = vmul.f32 %v1878_v34, %v528_v31  ;;  %vm537_vm3 = vweird.f32 %v1878_v34 }
 0x169   : > { %1879 = vrsqrt.f32 %v529_v35  ;;  %vm538_vm5 = vmor %vm536_vm4, %vm537_vm3  ;;  %vm546_vm7 = vweird.f32 %v529_v35  ;;  %vm1353_vm4 = vcmask 523264  }
 0x16a   : > { %v532_v37 = vmul.f32 %v1878_v34, %v531_v36 }
 0x16c   : > { %v533_v38 = vmul.f32 0.5, %v532_v37 }
 0x16e   : > { %v534_v39 = vsub.f32 1.5, %v533_v38 }
 0x16f   : > { %v1880_v40 = vpop.eup %1879 }
 0x170   : > { %v535_v41 = vmul.f32 %v1878_v34, %v534_v39  ;;  %v541_v42 = vmul.f32 %v1880_v40, %v529_v35  ;;  %vm547_vm6 = vweird.f32 %v1880_v40 }
 0x171   : > { %vm548_vm8 = vmor %vm546_vm7, %vm547_vm6 }
 0x172   : > { %v542_v43 = vmul.f32 %v1880_v40, %v541_v42  ;;  %v539_v44 = vsel %vm538_vm5, %v1878_v34, %v535_v41 }
 0x173   : > { %v550_v48 = vmul.f32 %v539_v44, %v516_v15 }
 0x174   : > { %v543_v45 = vmul.f32 0.5, %v542_v43 }
 0x175   : > { %v553_v53 = vmul.f32 %v552_v49, %v550_v48 }
 0x176   : > { %v544_v47 = vsub.f32 1.5, %v543_v45 }
 0x177   : > { %v556_v56 = vadd.f32 %v555_v54, %v553_v53 }
 0x178   : > { %v545_v50 = vmul.f32 %v1880_v40, %v544_v47 }
 0x17a   : > { %v549_v51 = vsel %vm548_vm8, %v1880_v40, %v545_v50 }
 0x17b   : > { %v551_v52 = vmul.f32 %v549_v51, %v517_v20 }
 0x17d   : > { %v554_v55 = vmul.f32 %v552_v49, %v551_v52 }
 0x17f   : > { %v557_v57 = vadd.f32 %v555_v54, %v554_v55 }
 0x181   : > { %v558_v58 = vpack.c.bf16 %v557_v57, %v556_v56 }
 0x183   : > { %1607 = vmatmul.msk.bf16.vlgmr.msra.gmra.mxu0 %vm500_vm1, %v558_v58  ;;  %1620 = vmatmul.msk.bf16.vlgmr.msra.gmra.mxu1 %vm500_vm1, %v558_v58 }
 0x184   : > { %1633 = vmatmul.msk.bf16.vlgmr.msra.gmra.mxu2 %vm500_vm1, %v558_v58 }
 0x200   : > { %v587_v59 = vpop.f32.mrf.mxu0  ;;  %v620_v60 = vpop.f32.mrf.mxu1 }
 0x201   : > { %692 = vrot.lane.b32.xlu0 %v620_v60, %s2178_s1  ;;  %v704_v61 = vpack.c.bf16 %v620_v60, %v620_v60  ;;  %v592_v63 = vmul.f32 0.35355338, %v587_v59 }
 0x203   : > { %v745_v62 = vsel %vm740_vm9, %v704_v61, 0  ;;  %v676_v1 = vpack.c.bf16 %v592_v63, %v592_v63 }
 0x204   : > { %754 = vmatpush.bf16.xpose.msra.mxu3 %v745_v62 }
 0x207   : > { %v2530_v16 = vpop.f32.mrf.mxu2 }
 0x208   : > { %v622_v0 = vpop.f32.mrf.mxu1  ;;  %v589_v5 = vpop.f32.mrf.mxu0  ;;  %v732_v18 = vpack.c.bf16 %v2530_v16, %v2530_v16 }
 0x209   : > { %698 = vrot.lane.b32.xlu0 %v620_v60, %s2179_s6  ;;  %700 = vrot.lane.b32.xlu1 %v622_v0, %s2179_s6  ;;  %v705_v3 = vpack.c.bf16 %v622_v0, %v622_v0  ;;  %v593_v7 = vmul.f32 0.35355338, %v589_v5  ;;  %v1844_v10 = vpack.i.bf16 %v622_v0, %v592_v63 }
 0x20a   : > { %688 = vrot.lane.b32.xlu2 %v622_v0, %s2180_s29  ;;  %v994_v26 = vsel %vm992_vm10, %v732_v18, 0 }
 0x20b   : > { %1634 = vmatmul.msk.bf16.vlgmr.msra.gmra.mxu3 %vm740_vm9, %v676_v1  ;;  %v764_v6 = vsel %vm740_vm9, %v705_v3, 0  ;;  %v677_v8 = vpack.c.bf16 %v593_v7, %v593_v7  ;;  %v1839_v9 = vpack.i.bf16 %v620_v60, %v593_v7 }
 0x20c   : > { %773 = vmatpush.bf16.xpose.msrb.mxu0 %v764_v6 }
 0x20f   : > { %v2538_v28 = vpop.f32.mrf.mxu2 }
 0x210   : > { %v733_v38 = vpack.c.bf16 %v2538_v28, %v2538_v28 }
 0x211   : > { %670 = vrot.lane.b32.xlu1 %v592_v63, %s2179_s6 }
 0x212   : > { %658 = vrot.lane.b32.xlu2 %v592_v63, %s2180_s29  ;;  %v1013_v43 = vsel %vm992_vm10, %v733_v38, 0 }
 0x213   : > { %1635 = vmatmul.msk.bf16.vlgmr.msrb.gmra.mxu0 %vm740_vm9, %v677_v8 }
 0x21a   : > { %1840 = vrot.lane.b32.xlu2 %v1839_v9, %s2180_s29 }
 0x222   : > { %1845 = vrot.lane.b32.xlu2 %v1844_v10, %s2178_s1 }
 0x22a   : > { %672 = vrot.lane.b32.xlu2 %v593_v7, %s2179_s6 }
 0x232   : > { %666 = vrot.lane.b32.xlu2 %v593_v7, %s2178_s1 }
 0x264   : > { %v689_v11 = vpop.permute.xlu2 %688 }
 0x265   : > { %v707_v13 = vpack.c.bf16 %v689_v11, %v689_v11 }
 0x267   : > { %v802_v14 = vsel %vm740_vm9, %v707_v13, 0 }
 0x268   : > { %811 = vmatpush.bf16.xpose.msrb.mxu2 %v802_v14 }
 0x26c   : > { %v659_v15 = vpop.permute.xlu2 %658 }
 0x26d   : > { %v678_v39 = vpack.c.bf16 %v659_v15, %v659_v15 }
 0x273   : > { %v693_v17 = vpop.permute.xlu0 %692 }
 0x274   : > { %v708_v19 = vpack.c.bf16 %v693_v17, %v693_v17  ;;  %v1841_v20 = vpop.permute.xlu2 %1840 }
 0x275   : > { %v1843_v21 = vunpack.i.h.bf16 %v1841_v20  ;;  %v1842_v22 = vunpack.i.l.bf16 %v1841_v20 }
 0x276   : > { %v821_v23 = vsel %vm740_vm9, %v708_v19, 0 }
 0x277   : > { %v706_v24 = vpack.c.bf16 %v1843_v21, %v1843_v21  ;;  %v679_v25 = vpack.c.bf16 %v1842_v22, %v1842_v22  ;;  %830 = vmatpush.bf16.xpose.msrb.mxu3 %v821_v23 }
 0x279   : > { %1637 = vmatmul.msk.bf16.vlgmr.msrb.gmra.mxu2 %vm740_vm9, %v679_v25  ;;  %v783_v27 = vsel %vm740_vm9, %v706_v24, 0  ;;  %v1849_v25 = vpack.i.bf16 %v2530_v16, %v2538_v28 }
 0x27a   : > { %792 = vmatpush.bf16.xpose.msrb.mxu1 %v783_v27 }
 0x27b   : > { %v699_v29 = vpop.permute.xlu0 %698  ;;  %v701_v30 = vpop.permute.xlu1 %700 }
 0x27c   : > { %v710_v31 = vpack.c.bf16 %v699_v29, %v699_v29  ;;  %v711_v32 = vpack.c.bf16 %v701_v30, %v701_v30  ;;  %v1846_v33 = vpop.permute.xlu2 %1845 }
 0x27d   : > { %v1848_v34 = vunpack.i.h.bf16 %v1846_v33  ;;  %v1847_v35 = vunpack.i.l.bf16 %v1846_v33 }
 0x27e   : > { %v859_v36 = vsel %vm740_vm9, %v710_v31, 0  ;;  %v878_v37 = vsel %vm740_vm9, %v711_v32, 0 }
 0x27f   : > { %1003 = vmatpush.bf16.msra.mxu3 %v994_v26  ;;  %v709_v40 = vpack.c.bf16 %v1848_v34, %v1848_v34  ;;  %v680_v41 = vpack.c.bf16 %v1847_v35, %v1847_v35  ;;  %887 = vmatpush.bf16.xpose.msra.mxu2 %v878_v37 }
 0x281   : > { %1636 = vmatmul.msk.bf16.vlgmr.msrb.gmra.mxu1 %vm740_vm9, %v678_v39  ;;  %1638 = vmatmul.msk.bf16.vlgmr.msrb.gmra.mxu3 %vm740_vm9, %v680_v41  ;;  %v840_v42 = vsel %vm740_vm9, %v709_v40, 0 }
 0x282   : > { %868 = vmatpush.bf16.xpose.msra.mxu1 %v859_v36  ;;  %849 = vmatpush.bf16.xpose.msra.mxu0 %v840_v42 }
 0x283   : > { %v671_v47 = vpop.permute.xlu1 %670 }
 0x284   : > { %v673_v44 = vpop.permute.xlu2 %672  ;;  %v682_v51 = vpack.c.bf16 %v671_v47, %v671_v47 }
 0x285   : > { %v683_v45 = vpack.c.bf16 %v673_v44, %v673_v44 }
 0x289   : > { %1641 = vmatmul.msk.bf16.vlgmr.msra.gmra.mxu2 %vm740_vm9, %v683_v45 }
 0x28a   : > { %1022 = vmatpush.bf16.msrb.mxu0 %v1013_v43 }
 0x28c   : > { %v667_v48 = vpop.permute.xlu2 %666 }
 0x28d   : > { %v681_v49 = vpack.c.bf16 %v667_v48, %v667_v48 }
 0x28e   : > { %v756_v50 = vpop.f32.mrf.mxu3 }
 0x28f   : > { %1639 = vmatmul.msk.bf16.vlgmr.msra.gmra.mxu0 %vm740_vm9, %v681_v49  ;;  %v893_v52 = vsel %vm740_vm9, %v756_v50, -inf }
 0x290   : > { %894 = vmax.xlane.f32.xlu0 %v893_v52  ;;  %v775_v53 = vpop.f32.mrf.mxu0 }
 0x291   : > { %1640 = vmatmul.msk.bf16.vlgmr.msra.gmra.mxu1 %vm740_vm9, %v682_v51  ;;  %v896_v54 = vsel %vm740_vm9, %v775_v53, -inf }
 0x292   : > { %897 = vmax.xlane.f32.xlu1 %v896_v54 }
 0x296   : > { %v758_v55 = vpop.f32.mrf.mxu3 }
 0x298   : > { %v777_v56 = vpop.f32.mrf.mxu0 }
 0x2fc   : > { %v813_v57 = vpop.f32.mrf.mxu2 }
 0x2fd   : > { %v902_v58 = vsel %vm740_vm9, %v813_v57, -inf }
 0x2fe   : > { %v794_v59 = vpop.f32.mrf.mxu1  ;;  %903 = vmax.xlane.f32.xlu2 %v902_v58 }
 0x2ff   : > { %v899_v60 = vsel %vm740_vm9, %v794_v59, -inf }
 0x300   : > { %900 = vmax.xlane.f32.xlu0 %v899_v60 }
 0x303   : > { %v895_v61 = vpop.xlane.xlu0 %894 }
 0x304   : > { %v917_v62 = vsub.f32 %v756_v50, %v895_v61  ;;  %v815_v63 = vpop.f32.mrf.mxu2  ;;  %v832_v0 = vpop.f32.mrf.mxu3 }
 0x305   : > { %v905_v1 = vsel %vm740_vm9, %v832_v0, -inf  ;;  %v898_v3 = vpop.xlane.xlu1 %897 }
 0x306   : > { %v925_v5 = vmul.f32 1.442695, %v917_v62  ;;  %v796_v6 = vpop.f32.mrf.mxu1  ;;  %906 = vmax.xlane.f32.xlu2 %v905_v1  ;;  %v918_v7 = vsub.f32 %v775_v53, %v898_v3  ;;  %v1854_v1 = vpack.i.bf16 %v2538_v28, %v2530_v16 }
 0x308   : > { %1881 = vpow2.f32 %v925_v5  ;;  %v927_v8 = vmul.f32 1.442695, %v918_v7 }
 0x30a   : > { %1883 = vpow2.f32 %v927_v8 }
 0x30c   : > { %v834_v9 = vpop.f32.mrf.mxu3  ;;  %v851_v10 = vpop.f32.mrf.mxu0 }
 0x30d   : > { %v889_v11 = vpop.f32.mrf.mxu2  ;;  %v908_v13 = vsel %vm740_vm9, %v851_v10, -inf }
 0x30e   : > { %v1882_v14 = vpop.eup %1881  ;;  %v870_v15 = vpop.f32.mrf.mxu1  ;;  %909 = vmax.xlane.f32.xlu0 %v908_v13  ;;  %v914_v24 = vsel %vm740_vm9, %v889_v11, -inf }
 0x30f   : > { %v911_v17 = vsel %vm740_vm9, %v870_v15, -inf  ;;  %v941_v18 = vsel %vm740_vm9, %v1882_v14, 0.0 }
 0x310   : > { %912 = vmax.xlane.f32.xlu2 %v911_v17  ;;  %942 = vadd.xlane.f32.xlu1 %v941_v18  ;;  %v1884_v19 = vpop.eup %1883 }
 0x311   : > { %v944_v23 = vsel %vm740_vm9, %v1884_v19, 0.0 }
 0x314   : > { %v853_v20 = vpop.f32.mrf.mxu0 }
 0x315   : > { %v891_v21 = vpop.f32.mrf.mxu2 }
 0x316   : > { %v872_v22 = vpop.f32.mrf.mxu1 }
 0x318   : > { %945 = vadd.xlane.f32.xlu2 %v944_v23  ;;  %915 = vmax.xlane.f32.xlu1 %v914_v24 }
 0x331   : > { %1850 = vrot.lane.b32.xlu1 %v1849_v25, %s2180_s29 }
 0x339   : > { %728 = vrot.lane.b32.xlu1 %v2538_v28, %s2179_s6 }
 0x341   : > { %726 = vrot.lane.b32.xlu1 %v2530_v16, %s2179_s6 }
 0x371   : > { %v904_v26 = vpop.xlane.xlu2 %903 }
 0x372   : > { %v920_v30 = vsub.f32 %v813_v57, %v904_v26 }
 0x373   : > { %v901_v27 = vpop.xlane.xlu0 %900 }
 0x374   : > { %v919_v29 = vsub.f32 %v794_v59, %v901_v27  ;;  %v931_v32 = vmul.f32 1.442695, %v920_v30 }
 0x376   : > { %v929_v31 = vmul.f32 1.442695, %v919_v29 }
 0x378   : > { %1885 = vpow2.f32 %v929_v31 }
 0x379   : > { %v907_v33 = vpop.xlane.xlu2 %906  ;;  %1887 = vpow2.f32 %v931_v32 }
 0x37a   : > { %v921_v34 = vsub.f32 %v832_v0, %v907_v33 }
 0x37c   : > { %v933_v35 = vmul.f32 1.442695, %v921_v34 }
 0x37e   : > { %v2568_v36 = vpop.eup %1885  ;;  %1889 = vpow2.f32 %v933_v35 }
 0x37f   : > { %v947_v37 = vsel %vm740_vm9, %v2568_v36, 0.0  ;;  %v2572_v40 = vpop.eup %1887 }
 0x380   : > { %948 = vadd.xlane.f32.xlu0 %v947_v37  ;;  %v950_v47 = vsel %vm740_vm9, %v2572_v40, 0.0 }
 0x381   : > { %v910_v38 = vpop.xlane.xlu0 %909 }
 0x382   : > { %v922_v39 = vsub.f32 %v851_v10, %v910_v38 }
 0x383   : > { %v913_v41 = vpop.xlane.xlu2 %912  ;;  %v943_v42 = vpop.xlane.xlu1 %942 }
 0x384   : > { %v2574_v43 = vpop.eup %1889  ;;  %v935_v44 = vmul.f32 1.442695, %v922_v39  ;;  %1891 = vrcp.f32 %v943_v42  ;;  %v923_v55 = vsub.f32 %v870_v15, %v913_v41 }
 0x385   : > { %v953_v45 = vsel %vm740_vm9, %v2574_v43, 0.0 }
 0x386   : > { %1893 = vpow2.f32 %v935_v44  ;;  %954 = vadd.xlane.f32.xlu2 %v953_v45  ;;  %v937_v59 = vmul.f32 1.442695, %v923_v55 }
 0x388   : > { %951 = vadd.xlane.f32.xlu0 %v950_v47 }
 0x38a   : > { %v1892_v48 = vpop.eup %1891 }
 0x38b   : > { %v973_v49 = vmul.f32 %v1892_v48, %v1882_v14  ;;  %v946_v50 = vpop.xlane.xlu2 %945  ;;  %v916_v51 = vpop.xlane.xlu1 %915 }
 0x38c   : > { %v2580_v52 = vpop.eup %1893  ;;  %1895 = vrcp.f32 %v946_v50  ;;  %v924_v53 = vsub.f32 %v889_v11, %v916_v51 }
 0x38d   : > { %v981_v54 = vpack.c.bf16 %v973_v49, %v973_v49  ;;  %v956_v57 = vsel %vm740_vm9, %v2580_v52, 0.0 }
 0x38e   : > { %v939_v56 = vmul.f32 1.442695, %v924_v53 }
 0x38f   : > { %1642 = vmatmul.msk.bf16.vlgmr.msra.gmra.mxu3 %vm740_vm9, %v981_v54 }
 0x390   : > { %1897 = vpow2.f32 %v939_v56  ;;  %957 = vadd.xlane.f32.xlu0 %v956_v57 }
 0x391   : > { %1899 = vpow2.f32 %v937_v59 }
 0x392   : > { %v1896_v58 = vpop.eup %1895 }
 0x393   : > { %v974_v60 = vmul.f32 %v1896_v58, %v1884_v19 }
 0x395   : > { %v982_v61 = vpack.c.bf16 %v974_v60, %v974_v60 }
 0x396   : > { %v2585_v62 = vpop.eup %1897 }
 0x397   : > { %1643 = vmatmul.msk.bf16.vlgmr.msrb.gmra.mxu0 %vm740_vm9, %v982_v61  ;;  %v962_v63 = vsel %vm740_vm9, %v2585_v62, 0.0  ;;  %v2590_v0 = vpop.eup %1899 }
 0x398   : > { %963 = vadd.xlane.f32.xlu0 %v962_v63  ;;  %v959_v3 = vsel %vm740_vm9, %v2590_v0, 0.0 }
 0x39e   : > { %1855 = vrot.lane.b32.xlu2 %v1854_v1, %s2178_s1 }
 0x3a0   : > { %960 = vadd.xlane.f32.xlu0 %v959_v3 }
 0x3a3   : > { %v1851_v5 = vpop.permute.xlu1 %1850 }
 0x3a4   : > { %v1853_v6 = vunpack.i.h.bf16 %v1851_v5  ;;  %v1852_v7 = vunpack.i.l.bf16 %v1851_v5 }
 0x3a6   : > { %v734_v8 = vpack.c.bf16 %v1853_v6, %v1853_v6  ;;  %v735_v9 = vpack.c.bf16 %v1852_v7, %v1852_v7 }
 0x3a8   : > { %v1032_v10 = vsel %vm992_vm10, %v734_v8, 0  ;;  %v1051_v11 = vsel %vm992_vm10, %v735_v9, 0  ;;  %v1701_v8 = vld [vmem:[%s2448_s13 + $0x8] sm:$0xff]  ;;  %v1700_v9 = vld [vmem:[%s2448_s13] sm:$0xff] }
 0x3a9   : > { %1041 = vmatpush.bf16.msrb.mxu1 %v1032_v10  ;;  %1060 = vmatpush.bf16.msrb.mxu2 %v1051_v11 }
 0x3ab   : > { %v729_v13 = vpop.permute.xlu1 %728 }
 0x3ac   : > { %v739_v14 = vpack.c.bf16 %v729_v13, %v729_v13 }
 0x3ae   : > { %v1127_v16 = vsel %vm992_vm10, %v739_v14, 0 }
 0x3af   : > { %1136 = vmatpush.bf16.msra.mxu2 %v1127_v16 }
 0x3b3   : > { %v727_v28 = vpop.permute.xlu1 %726 }
 0x3b4   : > { %v738_v15 = vpack.c.bf16 %v727_v28, %v727_v28 }
 0x3b6   : > { %v1108_v17 = vsel %vm992_vm10, %v738_v15, 0 }
 0x3b7   : > { %1117 = vmatpush.bf16.msra.mxu1 %v1108_v17 }
 0x3f3   : > { %v949_v18 = vpop.xlane.xlu0 %948 }
 0x3f4   : > { %1901 = vrcp.f32 %v949_v18 }
 0x3f9   : > { %v955_v19 = vpop.xlane.xlu2 %954 }
 0x3fa   : > { %v1902_v20 = vpop.eup %1901  ;;  %1903 = vrcp.f32 %v955_v19 }
 0x3fb   : > { %v975_v21 = vmul.f32 %v1902_v20, %v2568_v36  ;;  %v952_v22 = vpop.xlane.xlu0 %951 }
 0x3fc   : > { %1905 = vrcp.f32 %v952_v22 }
 0x3fd   : > { %v983_v23 = vpack.c.bf16 %v975_v21, %v975_v21 }
 0x3ff   : > { %1644 = vmatmul.msk.bf16.vlgmr.msrb.gmra.mxu1 %vm740_vm9, %v983_v23 }
 0x400   : > { %v1904_v24 = vpop.eup %1903 }
 0x401   : > { %v1856_v25 = vpop.permute.xlu2 %1855  ;;  %v977_v32 = vmul.f32 %v1904_v24, %v2574_v43 }
 0x402   : > { %v1906_v26 = vpop.eup %1905  ;;  %v1858_v27 = vunpack.i.h.bf16 %v1856_v25  ;;  %v1857_v29 = vunpack.i.l.bf16 %v1856_v25 }
 0x403   : > { %v976_v30 = vmul.f32 %v1906_v26, %v2572_v40  ;;  %v958_v31 = vpop.xlane.xlu0 %957  ;;  %v985_v38 = vpack.c.bf16 %v977_v32, %v977_v32  ;;  %v1210_v26 = vperm.slane %v2508_v46, 2 }
 0x404   : > { %v737_v33 = vpack.c.bf16 %v1858_v27, %v1858_v27  ;;  %v736_v34 = vpack.c.bf16 %v1857_v29, %v1857_v29  ;;  %1907 = vrcp.f32 %v958_v31 }
 0x405   : > { %v984_v35 = vpack.c.bf16 %v976_v30, %v976_v30 }
 0x406   : > { %v1070_v36 = vsel %vm992_vm10, %v736_v34, 0  ;;  %v1089_v37 = vsel %vm992_vm10, %v737_v33, 0 }
 0x407   : > { %1645 = vmatmul.msk.bf16.vlgmr.msrb.gmra.mxu2 %vm740_vm9, %v984_v35  ;;  %1079 = vmatpush.bf16.msrb.mxu3 %v1070_v36 }
 0x408   : > { %1098 = vmatpush.bf16.msra.mxu0 %v1089_v37 }
 0x40a   : > { %v1908_v39 = vpop.eup %1907  ;;  %1646 = vmatmul.msk.bf16.vlgmr.msrb.gmra.mxu3 %vm740_vm9, %v985_v38 }
 0x40b   : > { %v978_v40 = vmul.f32 %v1908_v39, %v2580_v52  ;;  %v964_v41 = vpop.xlane.xlu0 %963  ;;  %1200 = vmatpush.bf16.msra.mxu3 %v1701_v8 }
 0x40c   : > { %1909 = vrcp.f32 %v964_v41 }
 0x40d   : > { %v986_v42 = vpack.c.bf16 %v978_v40, %v978_v40 }
 0x40f   : > { %1647 = vmatmul.msk.bf16.vlgmr.msra.gmra.mxu0 %vm740_vm9, %v986_v42  ;;  %1201 = vmatpush.bf16.msra.mxu3 %v1700_v9 }
 0x412   : > { %v1910_v43 = vpop.eup %1909  ;;  %v1005_v44 = vpop.f32.mrf.mxu3 }
 0x413   : > { %v980_v45 = vmul.f32 %v1910_v43, %v2585_v62  ;;  %v961_v47 = vpop.xlane.xlu0 %960 }
 0x414   : > { %1911 = vrcp.f32 %v961_v47  ;;  %v1024_v48 = vpop.f32.mrf.mxu0 }
 0x415   : > { %v988_v49 = vpack.c.bf16 %v980_v45, %v980_v45  ;;  %v1703_v45 = vld [vmem:[%s2450_s21 + $0x8] sm:$0xff] }
 0x416   : > { %1293 = vmatpush.bf16.msrb.mxu0 %v1703_v45 }
 0x417   : > { %1649 = vmatmul.msk.bf16.vlgmr.msra.gmra.mxu2 %vm740_vm9, %v988_v49  ;;  %v1702_v49 = vld [vmem:[%s2450_s21] sm:$0xff] }
 0x41a   : > { %v1912_v50 = vpop.eup %1911  ;;  %v1007_v51 = vpop.f32.mrf.mxu3  ;;  %1294 = vmatpush.bf16.msrb.mxu0 %v1702_v49 }
 0x41b   : > { %v979_v53 = vmul.f32 %v1912_v50, %v2590_v0 }
 0x41c   : > { %v1026_v52 = vpop.f32.mrf.mxu0 }
 0x41d   : > { %v987_v54 = vpack.c.bf16 %v979_v53, %v979_v53 }
 0x41f   : > { %1648 = vmatmul.msk.bf16.vlgmr.msra.gmra.mxu1 %vm740_vm9, %v987_v54 }
 0x47c   : > { %v1043_v55 = vpop.f32.mrf.mxu1 }
 0x484   : > { %v1045_v56 = vpop.f32.mrf.mxu1 }
 0x48a   : > { %v1062_v57 = vpop.f32.mrf.mxu2 }
 0x48b   : > { %v1859_v58 = vpack.i.bf16 %v1062_v57, %v1043_v55 }
 0x48c   : > { %v1100_v59 = vpop.f32.mrf.mxu0 }
 0x48d   : > { %v1081_v60 = vpop.f32.mrf.mxu3  ;;  %1860 = vrot.lane.b32.xlu0 %v1859_v58, %s2181_s30 }
 0x48e   : > { %v1864_v61 = vpack.i.bf16 %v1100_v59, %v1081_v60 }
 0x490   : > { %1865 = vrot.lane.b32.xlu2 %v1864_v61, %s2182_s10 }
 0x492   : > { %v1064_v62 = vpop.f32.mrf.mxu2 }
 0x494   : > { %v1102_v63 = vpop.f32.mrf.mxu0 }
 0x495   : > { %v1083_v0 = vpop.f32.mrf.mxu3 }
 0x49a   : > { %v1138_v1 = vpop.f32.mrf.mxu2 }
 0x49c   : > { %v1119_v3 = vpop.f32.mrf.mxu1 }
 0x49d   : > { %v1869_v5 = vpack.i.bf16 %v1138_v1, %v1119_v3 }
 0x49f   : > { %1870 = vrot.lane.b32.xlu1 %v1869_v5, %s2183_s19 }
 0x4a2   : > { %v1140_v6 = vpop.f32.mrf.mxu2 }
 0x4a3   : > { %v1260_v6 = vperm.slane %v2508_v46, 4 }
 0x4a4   : > { %v1121_v7 = vpop.f32.mrf.mxu1 }
 0x4ea   : > { %v1866_v14 = vpop.permute.xlu2 %1865 }
 0x4eb   : > { %v1868_v15 = vunpack.i.h.bf16 %v1866_v14  ;;  %v1867_v17 = vunpack.i.l.bf16 %v1866_v14  ;;  %v1707_v14 = vld [vmem:[%s2474_s3 + $0x18] sm:$0xff] }
 0x4ec   : > { %1361 = vmatpush.bf16.msrb.mxu1 %v1707_v14 }
 0x4ff   : > { %v1861_v10 = vpop.permute.xlu0 %1860 }
 0x500   : > { %v1863_v11 = vunpack.i.h.bf16 %v1861_v10  ;;  %v1862_v13 = vunpack.i.l.bf16 %v1861_v10 }
 0x502   : > { %v1166_v16 = vsel %vm740_vm9, %v1005_v44, %v1862_v13  ;;  %v1167_v28 = vsel %vm740_vm9, %v1024_v48, %v1863_v11 }
 0x503   : > { %v1169_v21 = vsel %vm1168_vm11, %v1166_v16, %v1867_v17  ;;  %v1170_v22 = vsel %vm1168_vm11, %v1167_v28, %v1868_v15  ;;  %v1706_v16 = vld [vmem:[%s2474_s3 + $0x10] sm:$0xff]  ;;  %v1705_v28 = vld [vmem:[%s2474_s3 + $0x8] sm:$0xff]  ;;  %v1874_v15 = vld [vmem:[%s480_s18] ss:$0 sm:$0xff]  ;;  %s2786_s18 = smov %s2785_s11 }
 0x504   : > { %1362 = vmatpush.bf16.msrb.mxu1 %v1706_v16  ;;  %v1704_v17 = vld [vmem:[%s2474_s3] sm:$0xff]  ;;  %s2061_s3 = scalar_lea.hbm %s2786_s18, 32  ;;  %p2062_p1 = scmp.lt.s32.totalorder %s2056_s14, %s2786_s18 }
 0x505   : > { %p2063_p4 = scmp.lt.s32.totalorder %s2061_s3, %s2057_s23 }
 0x507   : > { %p2064_p8 = por %p2063_p4, %p2062_p1 }
 0x508   : > { %1363 = vmatpush.bf16.msrb.mxu1 %v1705_v28 }
 0x509   : > { %p2065_p3 = pnand %p2064_p8, %p2060_p5 }
 0x50c   : > { %1364 = vmatpush.bf16.msrb.mxu1 %v1704_v17 }
 0x511   : > { %v1871_v18 = vpop.permute.xlu1 %1870 }
 0x512   : > { %v1873_v19 = vunpack.i.h.bf16 %v1871_v18  ;;  %v1872_v20 = vunpack.i.l.bf16 %v1871_v18 }
 0x514   : > { %v1172_v23 = vsel %vm1171_vm12, %v1169_v21, %v1872_v20  ;;  %v1173_v24 = vsel %vm1171_vm12, %v1170_v22, %v1873_v19 }
 0x515   : > { %v1174_v25 = vpack.c.bf16 %v1173_v24, %v1172_v23 }
 0x517   : > { %1658 = vmatmul.msk.bf16.vlgmr.msra.gmra.mxu3 %vm500_vm1, %v1174_v25 }
 0x59a   : > { %v1203_v27 = vpop.f32.mrf.mxu3 }
 0x59b   : > { %v1208_v29 = vadd.f32 %v1203_v27, %v2482_v2 }
 0x59d   : > { %v2623_v30 = vadd.f32 %v1210_v26, %v1208_v29 }
 0x59f   : > { %v1213_v31 = vsel %vm500_vm1, %v2623_v30, 0.0 }
 0x5a0   : > { %1214 = vadd.xlane.f32.xlu2 %v1213_v31 }
 0x5a2   : > { %v1205_v32 = vpop.f32.mrf.mxu3 }
 0x5a3   : > { %v1209_v33 = vadd.f32 %v1205_v32, %v2487_v4 }
 0x5a5   : > { %v2628_v34 = vadd.f32 %v1210_v26, %v1209_v33 }
 0x5a7   : > { %v1216_v35 = vsel %vm500_vm1, %v2628_v34, 0.0 }
 0x5a8   : > { %1217 = vadd.xlane.f32.xlu1 %v1216_v35 }
 0x613   : > { %v1215_v36 = vpop.xlane.xlu2 %1214 }
 0x614   : > { %v1219_v37 = vmul.f32 %v1215_v36, %v2491_v12 }
 0x616   : > { %v1221_v2 = vsub.f32 %v2623_v30, %v1219_v37 }
 0x618   : > { %v1223_v38 = vmul.f32 %v1221_v2, %v1221_v2 }
 0x61a   : > { %v1225_v39 = vsel %vm500_vm1, %v1223_v38, 0.0 }
 0x61b   : > { %1226 = vadd.xlane.f32.xlu0 %v1225_v39  ;;  %v1218_v40 = vpop.xlane.xlu1 %1217 }
 0x61c   : > { %v1220_v4 = vmul.f32 %v1218_v40, %v2491_v12 }
 0x61e   : > { %v1222_v41 = vsub.f32 %v2628_v34, %v1220_v4 }
 0x620   : > { %v1224_v42 = vmul.f32 %v1222_v41, %v1222_v41 }
 0x622   : > { %v1228_v43 = vsel %vm500_vm1, %v1224_v42, 0.0  ;;  %v1328_v42 = vperm.slane %v2508_v46, 5 }
 0x623   : > { %1229 = vadd.xlane.f32.xlu2 %v1228_v43 }
 0x68e   : > { %v1227_v44 = vpop.xlane.xlu0 %1226 }
 0x68f   : > { %v1231_v47 = vmul.f32 %v1227_v44, %v2491_v12 }
 0x691   : > { %v1233_v48 = vadd.f32 1e-05, %v1231_v47 }
 0x693   : > { %1913 = vrsqrt.f32 %v1233_v48  ;;  %vm1241_vm14 = vweird.f32 %v1233_v48 }
 0x696   : > { %v1230_v50 = vpop.xlane.xlu2 %1229 }
 0x697   : > { %v1232_v51 = vmul.f32 %v1230_v50, %v2491_v12  ;;  %v1257_v12 = vperm.slane %v2508_v46, 3 }
 0x699   : > { %v1914_v53 = vpop.eup %1913  ;;  %v1234_v52 = vadd.f32 1e-05, %v1232_v51 }
 0x69a   : > { %v1236_v54 = vmul.f32 %v1914_v53, %v1233_v48  ;;  %vm1242_vm13 = vweird.f32 %v1914_v53 }
 0x69b   : > { %1915 = vrsqrt.f32 %v1234_v52  ;;  %vm1243_vm15 = vmor %vm1241_vm14, %vm1242_vm13  ;;  %vm1251_vm2 = vweird.f32 %v1234_v52 }
 0x69c   : > { %v1237_v55 = vmul.f32 %v1914_v53, %v1236_v54 }
 0x69e   : > { %v1238_v56 = vmul.f32 0.5, %v1237_v55 }
 0x6a0   : > { %v1239_v57 = vsub.f32 1.5, %v1238_v56 }
 0x6a1   : > { %v1916_v58 = vpop.eup %1915 }
 0x6a2   : > { %v1240_v59 = vmul.f32 %v1914_v53, %v1239_v57  ;;  %v1246_v60 = vmul.f32 %v1916_v58, %v1234_v52  ;;  %vm1252_vm0 = vweird.f32 %v1916_v58 }
 0x6a3   : > { %vm1253_vm3 = vmor %vm1251_vm2, %vm1252_vm0 }
 0x6a4   : > { %v1247_v61 = vmul.f32 %v1916_v58, %v1246_v60  ;;  %v1244_v62 = vsel %vm1243_vm15, %v1914_v53, %v1240_v59 }
 0x6a5   : > { %v1255_v1 = vmul.f32 %v1244_v62, %v1221_v2 }
 0x6a6   : > { %v1248_v63 = vmul.f32 0.5, %v1247_v61 }
 0x6a7   : > { %v1258_v7 = vmul.f32 %v1257_v12, %v1255_v1 }
 0x6a8   : > { %v1249_v0 = vsub.f32 1.5, %v1248_v63 }
 0x6a9   : > { %v1261_v10 = vadd.f32 %v1260_v6, %v1258_v7 }
 0x6aa   : > { %v1250_v3 = vmul.f32 %v1916_v58, %v1249_v0 }
 0x6ac   : > { %v1254_v5 = vsel %vm1253_vm3, %v1916_v58, %v1250_v3 }
 0x6ad   : > { %v1256_v8 = vmul.f32 %v1254_v5, %v1222_v41 }
 0x6af   : > { %v1259_v9 = vmul.f32 %v1257_v12, %v1256_v8 }
 0x6b1   : > { %v1262_v11 = vadd.f32 %v1260_v6, %v1259_v9 }
 0x6b3   : > { %v1263_v13 = vpack.c.bf16 %v1262_v11, %v1261_v10 }
 0x6b5   : > { %1667 = vmatmul.msk.bf16.vlgmr.msrb.gmra.mxu0 %vm500_vm1, %v1263_v13 }
 0x732   : > { %v1296_v18 = vpop.f32.mrf.mxu0 }
 0x733   : > { %v1297_v19 = vadd.f32 %v1874_v15, %v1296_v18 }
 0x735   : > { %v1303_v20 = vmul.f32 0.044715, %v1297_v19  ;;  %v1301_v2 = vmul.f32 0.5, %v1297_v19 }
 0x737   : > { %v1305_v21 = vmul.f32 %v1303_v20, %v1297_v19 }
 0x739   : > { %v1307_v22 = vmul.f32 %v1305_v21, %v1297_v19 }
 0x73a   : > { %v1298_v23 = vpop.f32.mrf.mxu0 }
 0x73b   : > { %v1309_v24 = vadd.f32 %v1307_v22, %v1297_v19  ;;  %v1299_v25 = vadd.f32 %v1874_v15, %v1298_v23 }
 0x73d   : > { %v1304_v26 = vmul.f32 0.044715, %v1299_v25  ;;  %v1311_v27 = vmul.f32 0.7978846, %v1309_v24  ;;  %v1302_v38 = vmul.f32 0.5, %v1299_v25 }
 0x73f   : > { %v1306_v29 = vmul.f32 %v1304_v26, %v1299_v25  ;;  %1917 = vtanh.f32 %v1311_v27 }
 0x741   : > { %v1308_v31 = vmul.f32 %v1306_v29, %v1299_v25 }
 0x743   : > { %v1310_v32 = vadd.f32 %v1308_v31, %v1299_v25 }
 0x745   : > { %v1312_v33 = vmul.f32 0.7978846, %v1310_v32  ;;  %v1918_v35 = vpop.eup %1917 }
 0x746   : > { %v1315_v36 = vadd.f32 1.0, %v1918_v35 }
 0x747   : > { %1919 = vtanh.f32 %v1312_v33 }
 0x748   : > { %v1317_v40 = vmul.f32 %v1315_v36, %v1301_v2 }
 0x74d   : > { %v1920_v37 = vpop.eup %1919 }
 0x74e   : > { %v1316_v39 = vadd.f32 1.0, %v1920_v37 }
 0x750   : > { %v1318_v4 = vmul.f32 %v1316_v39, %v1302_v38 }
 0x752   : > { %v1319_v41 = vpack.c.bf16 %v1318_v4, %v1317_v40 }
 0x754   : > { %1684 = vmatmul.msk.bf16.vlgmr.msrb.gmra.mxu1 %vm1353_vm4, %v1319_v41 }
 0x7d1   : > { %v1366_v43 = vpop.f32.mrf.mxu1 }
 0x7d2   : > { %v1367_v44 = vadd.f32 %v1366_v43, %v1328_v42 }
 0x7d4   : > { %v1371_v45 = vadd.f32 %v1367_v44, %v2623_v30 }
 0x7d6   : > { %1373 = vst.msk [vmem:[%s2476_s26] sm:$0xff] %vm500_vm1, %v1371_v45 }
 0x7d9   : > { %v1368_v47 = vpop.f32.mrf.mxu1 }
 0x7da   : > { %v1369_v48 = vadd.f32 %v1368_v47, %v1328_v42 }
 0x7dc   : > { %v1372_v49 = vadd.f32 %v1369_v48, %v2628_v34 }
 0x7de   : > { %1374 = vst.msk [vmem:[%s2476_s26 + $0x8] sm:$0xff] %vm500_vm1, %v1372_v49 }
 0x7df   : > { %2068 = shalt.err (!%p2065_p3)
}
 0x7e0   : > { %s2184_s0 = smov 128  }
 0x7e1   : > { %1718 = dma.vmem_to_hbm [thread:$0]  (%p2337_p6), %s1389_s2, 256, %s1391_s8, %s1376_s7, %s2184_s0, %s2184_s0, %s2181_s30  }
 0x7e2 PF: > { %s2787_s26 = sld [smem:[#allocation21_spill]] }
 0x7e3   : > { %s2788_s29 = sld [smem:[#allocation16_spill]] }
 0x7e8   : > { %p1738_p9 = scmp.ge.s32.totalorder %s2787_s26, 2 }
 0x7e9   : > { %s1405_s19 = sand.u32 1, %s2788_s29  }
 0x7ea   : > { %p1734_p0 = pnand %p1738_p9, %p2344_p2  ;;  %s1406_s13 = scalar_lea.sflag [#allocation4], %s1405_s19 }
 0x7ec   : > { %p1735_p10 = pneg %p1734_p0 }
 0x7ee   : > { %2126 = dma.done.wait (%p1735_p10), %s1406_s13, 256  }
 0x7ef   : > { %2128 = vsyncadd (%p1735_p10), %s1406_s13, 4294967040  ;;  %s29_s11 = sadd.s32 1, %s2787_s26   ;;  %s2790_s20 = sld [smem:[#allocation15_spill]] }
 0x7f0   : > { %p26_p12 = scmp.ge.s32.totalorder %s29_s11, 6   ;;  %s2791_s26 = sld [smem:[#allocation23_spill]] }
 0x7f1   : > { %s2792_s30 = sld [smem:[#allocation17_spill]]  ;;  %s2797_s24 = smov %s2135_s25 }
 0x7f2   : > { %s2793_s29 = sld [smem:[#allocation27_spill]]  ;;  %s2799_s27 = smov %s2147_s28 }
 0x7f3   : > { %s2794_s8 = sld [smem:[#allocation20_spill]] }
 0x7f4   : > { %s2795_s21 = sld [smem:[#allocation22_spill]] }
 0x7f5   : > { %s2796_s10 = sld [smem:[#allocation26_spill]]  ;;  %s2798_s25 = smov %s2790_s20 }
 0x7f6   :  { %28 = sbr.rel (!%p26_p12) target bundleno = 21 (0x15), region = 145 }
 0x7f7   : > { %s2800_s28 = smov %s2792_s30  ;;  %s2801_s30 = smov %s2163_s9 }
 0x7fa   : > { %s2802_s9 = smov %s2795_s21 }
 0x7fb   :  { %1412 = vsyncpa [#allocation3], 1 }
 0x7fc   :  { %1414 = vsyncpa [#allocation3 + $0x1], 1 }
 0x7fd   :  { %1415 = vsyncpa [#allocation6], 1 }
 0x7fe   :  { %1417 = vsyncpa [#allocation6 + $0x1], 1 }
 0x7ff   :  { %1418 = vsyncpa [#allocation9], 1 }
 0x800   :  { %1420 = vsyncpa [#allocation9 + $0x1], 1 }
 0x801   :  { %1421 = vsyncpa [#allocation4], 1 }
 0x802   :  { %1423 = vsyncpa [#allocation4 + $0x1], 1 }

</bundles_post_ra>
